<compile_context>
chip_gen: v7x
topology: tpu7x:2x2x1
jax: 0.10.0
libtpu: 0.0.40
codegen_flags: <defaults>
</compile_context>

<pallas_src>
import functools

import jax
import jax.numpy as jnp
from jax.experimental import pallas as pl
from jax.experimental.pallas import tpu as pltpu


# ---------------------------------------------------------------------------
# Pallas kernel: one block of BB batch elements (lane axis) per grid step.
# ---------------------------------------------------------------------------
def _vector_field_kernel(
    pairs,        # static: list of (i, j) with i < j
    n_dim,        # static: D
    r_ref,        # (D, NPAIR, BB)  pair distance vectors x_i - x_j   VMEM
    wt_ref,       # (K, 1, BB)      time-folded weights per (kernel, batch)
    fb_ref,       # (1, BB)         per-batch scalar bias (bias + importance folded)
    mus_ref,      # (K, 1, 1)       RBF means
    nig2_ref,     # (K, 1, 1)       -(exp(neg_log_gamma))**2  (negation pre-folded)
    out_ref,      # (D, P, BB)      forces, batch on lanes
):
    r = r_ref[...]                                   # (D, NPAIR, BB)

    # --- pair distances (compact size, tiny) --------------------------------
    d2 = r[0] * r[0]
    for dd in range(1, n_dim):
        d2 = d2 + r[dd] * r[dd]                      # (NPAIR, BB)
    d = jnp.sqrt(d2 + 1e-6)                          # distances_from_vectors eps

    # --- normalized radial basis functions ----------------------------------
    # Hot region: (K, NPAIR, BB).  K on the leading (untiled) axis, batch on
    # lanes -> every exp/mul runs at full 128-lane width.  (Optional further
    # step on v6e/v7x: run this block in bf16 for ~2x EUP throughput.)
    diff = d[None, :, :] - mus_ref[...]              # (K, NPAIR, BB)
    rbf = jnp.exp(diff * diff * nig2_ref[...])       # (K, NPAIR, BB)

    # Fold normalization + importance into the contraction (no 'kernels'/'feat'
    # tensors): s0 = sum_k rbf, s1 = sum_k rbf * w_t  -- leading-axis reductions
    # are plain vector adds.
    s0 = jnp.sum(rbf, axis=0)                        # (NPAIR, BB)
    s1 = jnp.sum(rbf * wt_ref[...], axis=0)          # (NPAIR, BB)

    denom = 1e-6 + s0
    inv = pl.reciprocal(denom, approx=True)          # EUP slot
    inv = inv * (2.0 - denom * inv)                  # one Newton step -> ~f32 accurate
    fm = s1 * inv + fb_ref[...]                      # (NPAIR, BB) pair force magnitude

    # --- scatter pair forces to particles (fm symmetric, r_ji = -r_ij) ------
    # Pure VPU broadcast/add, unrolled over the static pair list; the diagonal
    # pairs never exist, so no cancellation residue (review concern #2).
    n_particles = out_ref.shape[1]
    per_dim = []
    for dd in range(n_dim):
        g = fm * r[dd]                               # (NPAIR, BB)
        acc = [None] * n_particles
        for p, (i, j) in enumerate(pairs):
            gp = g[p:p + 1, :]                       # (1, BB), static row slice
            acc[i] = gp if acc[i] is None else acc[i] + gp
            acc[j] = (-gp) if acc[j] is None else acc[j] - gp
        per_dim.append(jnp.concatenate(acc, axis=0))         # (P, BB)

    out_ref[...] = jnp.stack(per_dim, axis=0).astype(out_ref.dtype)   # (D, P, BB)


# ---------------------------------------------------------------------------
# Block-batch selection (lane axis of every hot tensor).
# ---------------------------------------------------------------------------
def _choose_block_batch(B, n_pairs, n_kernels, vmem_budget=24 << 20):
    """Pick the per-grid-step batch block BB.

    * ~8 live f32 copies of the (K, NPAIR, BB) hot tensor must fit `vmem_budget`
      (24 MiB leaves headroom for double-buffered inputs even on v7x's 64 MiB VMEM).
    * Prefer the largest multiple-of-128 divisor of B that still yields >= 2 grid
      blocks: v7x's megacore shards the 'parallel' batch axis over both
      TensorCores; on single-TC v5e/v6e the extra grid step costs only ~0.35 us.
    * Otherwise use the largest divisor of B that fits the budget (a single big
      block is best on single-TC chips and keeps the lane axis as full as possible).
    """
    per_lane = 8 * 4 * n_pairs * n_kernels
    cap = max(1, vmem_budget // max(per_lane, 1))
    divisors = [d for d in range(B, 0, -1) if B % d == 0]
    for d in divisors:                                  # (a) >=2 lane-full blocks
        if d % 128 == 0 and d <= cap and B // d >= 2:
            return d
    for d in divisors:                                  # (b) largest block that fits
        if d <= cap:
            return d
    return 1


# ---------------------------------------------------------------------------
# Wrapper
# ---------------------------------------------------------------------------
def vector_field_forward(x_flat, t, params, n_particles, n_dimensions,
                         block_batch=None):
    """Pallas implementation of VectorField.forward (compute_divergence=False)."""
    B = x_flat.shape[0]
    P, D = n_particles, n_dimensions
    assert P >= 2, "VectorField needs at least two particles"
    x = x_flat.reshape(B, P, D).astype(jnp.float32)

    t = jnp.asarray(t, jnp.float32)
    if t.ndim == 0:
        t = jnp.broadcast_to(t, (B,))
    t = t.reshape(B)

    # ---- parameter-only math, hoisted out of the kernel ---------------------
    mus = params["mus"].astype(jnp.float32).reshape(-1)                 # (K,)
    nig2 = -(jnp.exp(params["nlg"].astype(jnp.float32).reshape(-1)) ** 2)
    mus_t = params["mus_t"].astype(jnp.float32).reshape(-1)             # (T,)
    igt2 = jnp.exp(params["nlg_t"].astype(jnp.float32).reshape(-1)) ** 2
    w = params["weights"].astype(jnp.float32)                           # (K, T)
    bias = params["bias"].astype(jnp.float32).reshape(-1)               # (T,)
    imp2 = params["importance"].astype(jnp.float32).reshape(-1) ** 2    # (K,)
    K = mus.shape[0]

    # ---- time head hoisted to the wrapper (tiny (B,T)/(K,B) XLA ops) --------
    dt = t[:, None] - mus_t[None, :]
    trbf = jnp.exp(-(dt * dt) * igt2[None, :])
    trbf = trbf / (1e-6 + jnp.sum(trbf, axis=-1, keepdims=True))        # (B, T)
    wt = w @ trbf.T                                                     # (K, B)
    fb = (imp2 @ wt + trbf @ bias)[None, :]                             # (1, B)
    wt = wt[:, None, :]                                                 # (K, 1, B)

    # ---- upper-triangle pair distance vectors, batch on the lane axis -------
    pairs = [(i, j) for i in range(P) for j in range(i + 1, P)]
    n_pairs = len(pairs)
    ii = jnp.array([p[0] for p in pairs], dtype=jnp.int32)
    jj = jnp.array([p[1] for p in pairs], dtype=jnp.int32)
    r_pairs = (x[:, ii, :] - x[:, jj, :]).transpose(2, 1, 0)            # (D, NPAIR, B)

    mus_c = mus.reshape(K, 1, 1)
    nig2_c = nig2.reshape(K, 1, 1)

    BB = block_batch if block_batch is not None else _choose_block_batch(B, n_pairs, K)
    assert B % BB == 0, f"block_batch {BB} must divide batch {B}"
    grid = (B // BB,)

    grid_spec = pl.GridSpec(
        grid=grid,
        in_specs=[
            pl.BlockSpec((D, n_pairs, BB), lambda b: (0, 0, b)),   # r_pairs
            pl.BlockSpec((K, 1, BB), lambda b: (0, 0, b)),         # time-folded weights
            pl.BlockSpec((1, BB), lambda b: (0, b)),               # folded scalar bias
            pl.BlockSpec((K, 1, 1), lambda b: (0, 0, 0)),          # mus
            pl.BlockSpec((K, 1, 1), lambda b: (0, 0, 0)),          # -(1/gamma)^2
        ],
        out_specs=pl.BlockSpec((D, P, BB), lambda b: (0, 0, b)),
    )

    out = pl.pallas_call(
        functools.partial(_vector_field_kernel, pairs, D),
        out_shape=jax.ShapeDtypeStruct((D, P, B), jnp.float32),
        grid_spec=grid_spec,
        compiler_params=pltpu.CompilerParams(
            dimension_semantics=("parallel",),
            # Block sizes are budgeted to ~24 MiB in _choose_block_batch; 40 MiB of
            # scoped VMEM is safe on every generation (v7x physical VMEM = 64 MiB)
            # and above the v5e/v6e default scoped limits.
            vmem_limit_bytes=40 * 1024 * 1024,
        ),
    )(r_pairs, wt, fb, mus_c, nig2_c)

    return out.transpose(2, 1, 0)                                       # (B, P, D)


# ---------------------------------------------------------------------------
# Pure-JAX reference (mirrors the PyTorch code, including diagonal removal)
# ---------------------------------------------------------------------------
def vector_field_reference(x_flat, t, params, n_particles, n_dimensions):
    B = x_flat.shape[0]
    P, D = n_particles, n_dimensions
    x = x_flat.reshape(B, P, D).astype(jnp.float32)

    mus = params["mus"].reshape(-1)
    inv_g = jnp.exp(params["nlg"].reshape(-1))
    mus_t = params["mus_t"].reshape(-1)
    inv_gt = jnp.exp(params["nlg_t"].reshape(-1))
    w = params["weights"]
    bias = params["bias"]
    imp = params["importance"].reshape(-1)

    # distance_vectors with remove_diagonal=True
    r_full = x[:, :, None, :] - x[:, None, :, :]                 # (B, P, P, D)
    offdiag = ~jnp.eye(P, dtype=bool)
    r = r_full[:, offdiag].reshape(B, P, P - 1, D)               # (B, P, P-1, D)
    d = jnp.sqrt(jnp.sum(r * r, axis=-1) + 1e-6)[..., None]      # (B, P, P-1, 1)

    rbfs = jnp.exp(-(d - mus) ** 2 * inv_g ** 2)                 # (B, P, P-1, K)
    kernels = rbfs / (1e-6 + rbfs.sum(-1, keepdims=True))
    force_mag = (kernels + imp ** 2) @ w + bias                  # (B, P, P-1, T)

    trbf = jnp.exp(-(t[:, None] - mus_t) ** 2 * inv_gt ** 2)     # (B, T)
    trbf = trbf / (1e-6 + trbf.sum(-1, keepdims=True))
    force_mag = (force_mag * trbf[:, None, None, :]).sum(-1, keepdims=True)

    forces = (r * force_mag).sum(-2)                             # (B, P, D)
    return forces


# ---------------------------------------------------------------------------
if __name__ == "__main__":
    # Module configuration: shape = (n_particles, n_dimensions), cutoff, hidden_dim
    P, D = 4, 2
    HIDDEN_DIM = 32          # n_kernels (K)
    T_KERNELS = 20           # mus_time = linspace(0, 1, 20) -> n_out
    CUTOFF = 5.0
    B = 256                  # batch = lane axis; two 128-lane 'parallel' grid blocks

    key = jax.random.PRNGKey(0)
    kw, kb, ki, kx, kt = jax.random.split(key, 5)

    # Parameter initialization mirroring __init__ / _init_mus_gammas (bias and
    # importance made non-zero so their code paths are actually exercised).
    mus = jnp.linspace(0.0, CUTOFF, HIDDEN_DIM)
    nlg = -jnp.log(0.3 * jnp.ones((HIDDEN_DIM,), jnp.float32))
    mus_t = jnp.linspace(0.0, 1.0, T_KERNELS)
    nlg_t = -jnp.log(0.3 * jnp.ones((T_KERNELS,), jnp.float32))
    weights = (jax.random.normal(kw, (HIDDEN_DIM, T_KERNELS), jnp.float32)
               * jnp.sqrt(1.0 / HIDDEN_DIM))
    bias = 0.01 * jax.random.normal(kb, (1, T_KERNELS), jnp.float32)
    importance = 0.1 * jax.random.normal(ki, (HIDDEN_DIM,), jnp.float32)

    params = dict(mus=mus.astype(jnp.float32), nlg=nlg.astype(jnp.float32),
                  mus_t=mus_t.astype(jnp.float32), nlg_t=nlg_t.astype(jnp.float32),
                  weights=weights, bias=bias, importance=importance)

    # Inputs: x as [B, P*D] (flattened state), t as [B]
    x = jax.random.normal(kx, (B, P * D), dtype=jnp.float32)
    t = jax.random.uniform(kt, (B,), dtype=jnp.float32)

    fwd = jax.jit(functools.partial(
        vector_field_forward, n_particles=P, n_dimensions=D))
    forces = jax.block_until_ready(fwd(x, t, params))

    ref = vector_field_reference(x, t, params, P, D)
    assert forces.shape == (B, P, D)
    max_err = jnp.max(jnp.abs(forces - ref))
    assert jnp.allclose(forces, ref, rtol=5e-4, atol=5e-5), (
        f"mismatch: max abs err {max_err}")

    print("KERNEL_OK")
</pallas_src>

<mosaic_0001>
module attributes {stable_mosaic.version = 11 : i64} {
  func.func @_vector_field_kernel(%arg0: i32, %arg1: memref<2x6x128xf32, #tpu.memory_space<vmem>>, %arg2: memref<32x1x128xf32, #tpu.memory_space<vmem>>, %arg3: memref<1x128xf32, #tpu.memory_space<vmem>>, %arg4: memref<32x1x1xf32, #tpu.memory_space<vmem>>, %arg5: memref<32x1x1xf32, #tpu.memory_space<vmem>>, %arg6: memref<2x4x128xf32, #tpu.memory_space<vmem>>) attributes {dimension_semantics = [#tpu.dimension_semantics<parallel>], iteration_bounds = array<i64: 2>, scalar_prefetch = 0 : i64, scratch_operands = 0 : i64, tpu.core_type = #tpu.core_type<tc>, window_params = [{transform_indices = @transform_0, window_bounds = array<i64: 2, 6, 128>}, {transform_indices = @transform_1, window_bounds = array<i64: 32, 1, 128>}, {transform_indices = @transform_2, window_bounds = array<i64: 1, 128>}, {pipeline_mode = #tpu.pipeline_mode<synchronous>, transform_indices = @transform_3, window_bounds = array<i64: 32, 1, 1>}, {pipeline_mode = #tpu.pipeline_mode<synchronous>, transform_indices = @transform_4, window_bounds = array<i64: 32, 1, 1>}, {transform_indices = @transform_5, window_bounds = array<i64: 2, 4, 128>}]} {
    %c0 = arith.constant 0 : index
    %c0_0 = arith.constant 0 : index
    %c0_1 = arith.constant 0 : index
    %0 = vector.load %arg1[%c0, %c0_0, %c0_1] : memref<2x6x128xf32, #tpu.memory_space<vmem>>, vector<2x6x128xf32>
    %1 = vector.extract_strided_slice %0 {offsets = [0, 0, 0], sizes = [1, 6, 128], strides = [1, 1, 1]} : vector<2x6x128xf32> to vector<1x6x128xf32>
    %2 = vector.shape_cast %1 : vector<1x6x128xf32> to vector<6x128xf32>
    %3 = vector.extract_strided_slice %0 {offsets = [0, 0, 0], sizes = [1, 6, 128], strides = [1, 1, 1]} : vector<2x6x128xf32> to vector<1x6x128xf32>
    %4 = vector.shape_cast %3 : vector<1x6x128xf32> to vector<6x128xf32>
    %5 = arith.mulf %2, %4 : vector<6x128xf32>
    %6 = vector.extract_strided_slice %0 {offsets = [1, 0, 0], sizes = [1, 6, 128], strides = [1, 1, 1]} : vector<2x6x128xf32> to vector<1x6x128xf32>
    %7 = vector.shape_cast %6 : vector<1x6x128xf32> to vector<6x128xf32>
    %8 = vector.extract_strided_slice %0 {offsets = [1, 0, 0], sizes = [1, 6, 128], strides = [1, 1, 1]} : vector<2x6x128xf32> to vector<1x6x128xf32>
    %9 = vector.shape_cast %8 : vector<1x6x128xf32> to vector<6x128xf32>
    %10 = arith.mulf %7, %9 : vector<6x128xf32>
    %11 = arith.addf %5, %10 : vector<6x128xf32>
    %cst = arith.constant 9.99999997E-7 : f32
    %12 = vector.broadcast %cst : f32 to vector<6x128xf32>
    %13 = arith.addf %11, %12 : vector<6x128xf32>
    %14 = math.sqrt %13 : vector<6x128xf32>
    %15 = vector.shape_cast %14 : vector<6x128xf32> to vector<1x6x128xf32>
    %c0_2 = arith.constant 0 : index
    %c0_3 = arith.constant 0 : index
    %c0_4 = arith.constant 0 : index
    %16 = vector.load %arg4[%c0_2, %c0_3, %c0_4] : memref<32x1x1xf32, #tpu.memory_space<vmem>>, vector<32x1x1xf32>
    %17 = vector.broadcast %15 : vector<1x6x128xf32> to vector<32x6x128xf32>
    %18 = vector.broadcast %16 : vector<32x1x1xf32> to vector<32x6x128xf32>
    %19 = arith.subf %17, %18 : vector<32x6x128xf32>
    %20 = arith.mulf %19, %19 : vector<32x6x128xf32>
    %c0_5 = arith.constant 0 : index
    %c0_6 = arith.constant 0 : index
    %c0_7 = arith.constant 0 : index
    %21 = vector.load %arg5[%c0_5, %c0_6, %c0_7] : memref<32x1x1xf32, #tpu.memory_space<vmem>>, vector<32x1x1xf32>
    %22 = vector.broadcast %21 : vector<32x1x1xf32> to vector<32x6x128xf32>
    %23 = arith.mulf %20, %22 : vector<32x6x128xf32>
    %24 = math.exp %23 : vector<32x6x128xf32>
    %cst_8 = arith.constant dense<0.000000e+00> : vector<6x128xf32>
    %25 = vector.multi_reduction <add>, %24, %cst_8 [0] : vector<32x6x128xf32> to vector<6x128xf32>
    %c0_9 = arith.constant 0 : index
    %c0_10 = arith.constant 0 : index
    %c0_11 = arith.constant 0 : index
    %26 = vector.load %arg2[%c0_9, %c0_10, %c0_11] : memref<32x1x128xf32, #tpu.memory_space<vmem>>, vector<32x1x128xf32>
    %27 = vector.broadcast %26 : vector<32x1x128xf32> to vector<32x6x128xf32>
    %28 = arith.mulf %24, %27 : vector<32x6x128xf32>
    %cst_12 = arith.constant dense<0.000000e+00> : vector<6x128xf32>
    %29 = vector.multi_reduction <add>, %28, %cst_12 [0] : vector<32x6x128xf32> to vector<6x128xf32>
    %cst_13 = arith.constant 9.99999997E-7 : f32
    %30 = vector.broadcast %cst_13 : f32 to vector<6x128xf32>
    %31 = arith.addf %30, %25 : vector<6x128xf32>
    %32 = tpu.reciprocal %31 {approx = true} : vector<6x128xf32> -> vector<6x128xf32>
    %33 = arith.mulf %31, %32 : vector<6x128xf32>
    %cst_14 = arith.constant 2.000000e+00 : f32
    %34 = vector.broadcast %cst_14 : f32 to vector<6x128xf32>
    %35 = arith.subf %34, %33 : vector<6x128xf32>
    %36 = arith.mulf %32, %35 : vector<6x128xf32>
    %37 = arith.mulf %29, %36 : vector<6x128xf32>
    %c0_15 = arith.constant 0 : index
    %c0_16 = arith.constant 0 : index
    %38 = vector.load %arg3[%c0_15, %c0_16] : memref<1x128xf32, #tpu.memory_space<vmem>>, vector<1x128xf32>
    %39 = vector.broadcast %38 : vector<1x128xf32> to vector<6x128xf32>
    %40 = arith.addf %37, %39 : vector<6x128xf32>
    %41 = vector.extract_strided_slice %0 {offsets = [0, 0, 0], sizes = [1, 6, 128], strides = [1, 1, 1]} : vector<2x6x128xf32> to vector<1x6x128xf32>
    %42 = vector.shape_cast %41 : vector<1x6x128xf32> to vector<6x128xf32>
    %43 = arith.mulf %40, %42 : vector<6x128xf32>
    %44 = vector.extract_strided_slice %43 {offsets = [0, 0], sizes = [1, 128], strides = [1, 1]} : vector<6x128xf32> to vector<1x128xf32>
    %cst_17 = arith.constant 0.000000e+00 : f32
    %45 = vector.broadcast %cst_17 : f32 to vector<1x128xf32>
    %46 = arith.subf %45, %44 : vector<1x128xf32>
    %47 = vector.extract_strided_slice %43 {offsets = [1, 0], sizes = [1, 128], strides = [1, 1]} : vector<6x128xf32> to vector<1x128xf32>
    %48 = arith.addf %44, %47 : vector<1x128xf32>
    %cst_18 = arith.constant 0.000000e+00 : f32
    %49 = vector.broadcast %cst_18 : f32 to vector<1x128xf32>
    %50 = arith.subf %49, %47 : vector<1x128xf32>
    %51 = vector.extract_strided_slice %43 {offsets = [2, 0], sizes = [1, 128], strides = [1, 1]} : vector<6x128xf32> to vector<1x128xf32>
    %52 = arith.addf %48, %51 : vector<1x128xf32>
    %cst_19 = arith.constant 0.000000e+00 : f32
    %53 = vector.broadcast %cst_19 : f32 to vector<1x128xf32>
    %54 = arith.subf %53, %51 : vector<1x128xf32>
    %55 = vector.extract_strided_slice %43 {offsets = [3, 0], sizes = [1, 128], strides = [1, 1]} : vector<6x128xf32> to vector<1x128xf32>
    %56 = arith.addf %46, %55 : vector<1x128xf32>
    %57 = arith.subf %50, %55 : vector<1x128xf32>
    %58 = vector.extract_strided_slice %43 {offsets = [4, 0], sizes = [1, 128], strides = [1, 1]} : vector<6x128xf32> to vector<1x128xf32>
    %59 = arith.addf %56, %58 : vector<1x128xf32>
    %60 = arith.subf %54, %58 : vector<1x128xf32>
    %61 = vector.extract_strided_slice %43 {offsets = [5, 0], sizes = [1, 128], strides = [1, 1]} : vector<6x128xf32> to vector<1x128xf32>
    %62 = arith.addf %57, %61 : vector<1x128xf32>
    %63 = arith.subf %60, %61 : vector<1x128xf32>
    %64 = tpu.concatenate %52, %59, %62, %63 in 0 : vector<1x128xf32>, vector<1x128xf32>, vector<1x128xf32>, vector<1x128xf32> -> vector<4x128xf32>
    %65 = vector.extract_strided_slice %0 {offsets = [1, 0, 0], sizes = [1, 6, 128], strides = [1, 1, 1]} : vector<2x6x128xf32> to vector<1x6x128xf32>
    %66 = vector.shape_cast %65 : vector<1x6x128xf32> to vector<6x128xf32>
    %67 = arith.mulf %40, %66 : vector<6x128xf32>
    %68 = vector.extract_strided_slice %67 {offsets = [0, 0], sizes = [1, 128], strides = [1, 1]} : vector<6x128xf32> to vector<1x128xf32>
    %cst_20 = arith.constant 0.000000e+00 : f32
    %69 = vector.broadcast %cst_20 : f32 to vector<1x128xf32>
    %70 = arith.subf %69, %68 : vector<1x128xf32>
    %71 = vector.extract_strided_slice %67 {offsets = [1, 0], sizes = [1, 128], strides = [1, 1]} : vector<6x128xf32> to vector<1x128xf32>
    %72 = arith.addf %68, %71 : vector<1x128xf32>
    %cst_21 = arith.constant 0.000000e+00 : f32
    %73 = vector.broadcast %cst_21 : f32 to vector<1x128xf32>
    %74 = arith.subf %73, %71 : vector<1x128xf32>
    %75 = vector.extract_strided_slice %67 {offsets = [2, 0], sizes = [1, 128], strides = [1, 1]} : vector<6x128xf32> to vector<1x128xf32>
    %76 = arith.addf %72, %75 : vector<1x128xf32>
    %cst_22 = arith.constant 0.000000e+00 : f32
    %77 = vector.broadcast %cst_22 : f32 to vector<1x128xf32>
    %78 = arith.subf %77, %75 : vector<1x128xf32>
    %79 = vector.extract_strided_slice %67 {offsets = [3, 0], sizes = [1, 128], strides = [1, 1]} : vector<6x128xf32> to vector<1x128xf32>
    %80 = arith.addf %70, %79 : vector<1x128xf32>
    %81 = arith.subf %74, %79 : vector<1x128xf32>
    %82 = vector.extract_strided_slice %67 {offsets = [4, 0], sizes = [1, 128], strides = [1, 1]} : vector<6x128xf32> to vector<1x128xf32>
    %83 = arith.addf %80, %82 : vector<1x128xf32>
    %84 = arith.subf %78, %82 : vector<1x128xf32>
    %85 = vector.extract_strided_slice %67 {offsets = [5, 0], sizes = [1, 128], strides = [1, 1]} : vector<6x128xf32> to vector<1x128xf32>
    %86 = arith.addf %81, %85 : vector<1x128xf32>
    %87 = arith.subf %84, %85 : vector<1x128xf32>
    %88 = tpu.concatenate %76, %83, %86, %87 in 0 : vector<1x128xf32>, vector<1x128xf32>, vector<1x128xf32>, vector<1x128xf32> -> vector<4x128xf32>
    %89 = vector.shape_cast %64 : vector<4x128xf32> to vector<1x4x128xf32>
    %90 = vector.shape_cast %88 : vector<4x128xf32> to vector<1x4x128xf32>
    %91 = tpu.concatenate %89, %90 in 0 : vector<1x4x128xf32>, vector<1x4x128xf32> -> vector<2x4x128xf32>
    %c0_23 = arith.constant 0 : index
    %c0_24 = arith.constant 0 : index
    %c0_25 = arith.constant 0 : index
    %92 = vector.load %arg6[%c0_23, %c0_24, %c0_25] : memref<2x4x128xf32, #tpu.memory_space<vmem>>, vector<2x4x128xf32>
    tpu.vector_store %arg6[%c0_23, %c0_24, %c0_25], %91 {strides = array<i32>} : memref<2x4x128xf32, #tpu.memory_space<vmem>>, vector<2x4x128xf32>,
    return
  }
  func.func @transform_0(%arg0: i32) -> (i32, i32, i32) {
    %c0_i32 = arith.constant 0 : i32
    %c0_i32_0 = arith.constant 0 : i32
    %c0_i32_1 = arith.constant 0 : i32
    return %c0_i32, %c0_i32_0, %arg0 : i32, i32, i32
  }
  func.func @transform_1(%arg0: i32) -> (i32, i32, i32) {
    %c0_i32 = arith.constant 0 : i32
    %c0_i32_0 = arith.constant 0 : i32
    %c0_i32_1 = arith.constant 0 : i32
    return %c0_i32, %c0_i32_0, %arg0 : i32, i32, i32
  }
  func.func @transform_2(%arg0: i32) -> (i32, i32) {
    %c0_i32 = arith.constant 0 : i32
    %c0_i32_0 = arith.constant 0 : i32
    return %c0_i32, %arg0 : i32, i32
  }
  func.func @transform_3(%arg0: i32) -> (i32, i32, i32) {
    %c0_i32 = arith.constant 0 : i32
    %c0_i32_0 = arith.constant 0 : i32
    %c0_i32_1 = arith.constant 0 : i32
    %c0_i32_2 = arith.constant 0 : i32
    return %c0_i32, %c0_i32_0, %c0_i32_1 : i32, i32, i32
  }
  func.func @transform_4(%arg0: i32) -> (i32, i32, i32) {
    %c0_i32 = arith.constant 0 : i32
    %c0_i32_0 = arith.constant 0 : i32
    %c0_i32_1 = arith.constant 0 : i32
    %c0_i32_2 = arith.constant 0 : i32
    return %c0_i32, %c0_i32_0, %c0_i32_1 : i32, i32, i32
  }
  func.func @transform_5(%arg0: i32) -> (i32, i32, i32) {
    %c0_i32 = arith.constant 0 : i32
    %c0_i32_0 = arith.constant 0 : i32
    %c0_i32_1 = arith.constant 0 : i32
    return %c0_i32, %c0_i32_0, %arg0 : i32, i32, i32
  }
}

</mosaic_0001>

<bundles_post_ra>
// kernel: integer_pow.5
= control target key start
LH: loop header
LB: loop body
LE: loop exit
PB: predicated region body
PF: predicated region fallthrough
CT: control target
= control target key end

     0   :  { %s34_s0 = inlined_call_operand.vmem [shape: f32[32], index: 0, kind: input, shape index: {}, may-alias: {0,1}]   ;;  %s35_s1 = inlined_call_operand.vmem [shape: f32[32], index: 1, kind: input, shape index: {}, may-alias: {0,1}]   ;;  %s36_s2 = inlined_call_operand.vmem [shape: f32[32], index: 2, kind: output, shape index: {}]  }
   0x1   :  { %v3_v0 = vld [vmem:[%s34_s0] sm:$0x1] }
   0x2   :  { %v4_v1 = vld [vmem:[%s35_s1] sm:$0x1] }
   0x3   :  { %v7_v2 = vmul.f32 %v4_v1, %v3_v0 }
   0x5   :  { %9 = vst [vmem:[%s36_s2] sm:$0x1] %v7_v2 }

// kernel: vector_field_forward.1
= control target key start
LH: loop header
LB: loop body
LE: loop exit
PB: predicated region body
PF: predicated region fallthrough
CT: control target
= control target key end

     0   :  { %s2126_s18 = smov 0   ;;  %s2128_s19 = smov 0   ;;  %s2691_s0 = inlined_call_operand.vmem [shape: f32[2,6,256], index: 0, kind: input, shape index: {}]   ;;  %s2692_s1 = inlined_call_operand.vmem [shape: f32[32,1,256], index: 1, kind: input, shape index: {}]   ;;  %s2693_s2 = inlined_call_operand.vmem [shape: f32[1,256], index: 2, kind: input, shape index: {}]   ;;  %s2694_s3 = inlined_call_operand.vmem [shape: f32[32,1,1], index: 3, kind: input, shape index: {}]   ;;  %s2695_s4 = inlined_call_operand.vmem [shape: f32[32,1,1], index: 4, kind: input, shape index: {}]   ;;  %s2696_s5 = inlined_call_operand.vmem [shape: f32[2,4,256], index: 5, kind: output, shape index: {}]  }
   0x1   :  { %s2130_s20 = smov 0  }
   0x2 LB: > { %s2142_s21 = sadd.s32 4294967295, %s2093_s20   ;;  %s2145_s22 = sadd.s32 1, %s2093_s20   ;;  %s2093_s20 = sphi %s2130_s20, %s2701_s20   ;;  %s2089_s19 = sphi %s2128_s19, %s2700_s19   ;;  %s2085_s18 = sphi %s2126_s18, %s2699_s18  }
   0x3   : > { %s19_s23 = ssub.s32 %s2093_s20, %s2145_s22  ;;  %s22_s24 = sadd.s32 1, %s2089_s19 }
   0x4   : > { %p20_p0 = scmp.eq.s32.totalorder %s19_s23, 0  ;;  %p29_p1 = scmp.ne.s32.totalorder %s2089_s19, %s2085_s18 }
   0x5   : > { %p30_p2 = scmp.eq.s32.totalorder %s2093_s20, 0  ;;  %p153_p3 = scmp.eq.s32.totalorder %s2142_s21, 1 }
   0x6   : > { %s2155_s25 = scalar_select %p20_p0, %s2089_s19, %s22_s24  }
   0x7   : > { %p2157_p4 = por %p30_p2, %p29_p1  ;;  %p2161_p5 = por %p153_p3, %p29_p1 }
   0x8   : > { %p1867_p6 = scmp.ge.s32.totalorder %s2093_s20, 2 }
   0xa   : > { %181 = sbr.rel (%p1867_p6) target bundleno = 48 (0x30), region = 24 }
  0x11   : > { %184 = sbr.rel (!%p2157_p4) target bundleno = 24 (0x18), region = 28  ;;  %s186_s28 = sand.u32 (%p2157_p4), 1, %s2089_s19  }
  0x12   : > { %s1869_s29 = sshll.u32 (%p2157_p4), %s2093_s20, 3  ;;  %s1868_s30 = sshll.u32 (%p2157_p4), %s186_s28, 4 }
  0x13   : > { %s190_s8 = scalar_lea.vmem (%p2157_p4), %s2691_s0, %s1869_s29  ;;  %s188_s9 = scalar_lea.vmem (%p2157_p4), [#allocation2], %s1868_s30 }
  0x14   : > { %v220_v0 = vld [vmem:[%s190_s8] sm:$0xff] (%p2157_p4)  ;;  %v222_v1 = vld [vmem:[%s190_s8 + $0x10] sm:$0xff] (%p2157_p4) }
  0x15   : > { %221 = vst [vmem:[%s188_s9] sm:$0xff] (%p2157_p4), %v220_v0  ;;  %223 = vst [vmem:[%s188_s9 + $0x8] sm:$0xff] (%p2157_p4), %v222_v1 }
  0x18 PF: > { %229 = sbr.rel (!%p2157_p4) target bundleno = 48 (0x30), region = 66  ;;  %s231_s10 = sand.u32 (%p2157_p4), 1, %s2089_s19  }
  0x19   : > { %s2180_s13 = scalar_lea.vmem (%p2157_p4), %s2692_s1, %s2093_s20  ;;  %s1870_s14 = sshll.u32 (%p2157_p4), %s231_s10, 5 }
  0x1a   : > { %v250_v2 = vld [vmem:[%s2180_s13] sm:$0x1] (%p2157_p4)  ;;  %v252_v3 = vld [vmem:[%s2180_s13 + $0x2] sm:$0x1] (%p2157_p4)  ;;  %v254_v4 = vld [vmem:[%s2180_s13 + $0x4] sm:$0x1] (%p2157_p4) }
  0x1b   : > { %v256_v5 = vld [vmem:[%s2180_s13 + $0x6] sm:$0x1] (%p2157_p4)  ;;  %s2186_s15 = scalar_lea.vmem (%p2157_p4), [#allocation3], %s1870_s14  ;;  %v258_v6 = vld [vmem:[%s2180_s13 + $0x8] sm:$0x1] (%p2157_p4) }
  0x1c   : > { %251 = vst [vmem:[%s2186_s15] sm:$0x1] (%p2157_p4), %v250_v2  ;;  %253 = vst [vmem:[%s2186_s15 + $0x1] sm:$0x1] (%p2157_p4), %v252_v3  ;;  %v260_v7 = vld [vmem:[%s2180_s13 + $0xa] sm:$0x1] (%p2157_p4) }
  0x1d   : > { %255 = vst [vmem:[%s2186_s15 + $0x2] sm:$0x1] (%p2157_p4), %v254_v4  ;;  %257 = vst [vmem:[%s2186_s15 + $0x3] sm:$0x1] (%p2157_p4), %v256_v5  ;;  %v262_v8 = vld [vmem:[%s2180_s13 + $0xc] sm:$0x1] (%p2157_p4) }
  0x1e   : > { %259 = vst [vmem:[%s2186_s15 + $0x4] sm:$0x1] (%p2157_p4), %v258_v6  ;;  %261 = vst [vmem:[%s2186_s15 + $0x5] sm:$0x1] (%p2157_p4), %v260_v7  ;;  %v264_v9 = vld [vmem:[%s2180_s13 + $0xe] sm:$0x1] (%p2157_p4) }
  0x1f   : > { %263 = vst [vmem:[%s2186_s15 + $0x6] sm:$0x1] %v262_v8  ;;  %v266_v10 = vld [vmem:[%s2180_s13 + $0x10] sm:$0x1]  ;;  %v268_v11 = vld [vmem:[%s2180_s13 + $0x12] sm:$0x1] }
  0x20   : > { %265 = vst [vmem:[%s2186_s15 + $0x7] sm:$0x1] %v264_v9  ;;  %267 = vst [vmem:[%s2186_s15 + $0x8] sm:$0x1] %v266_v10  ;;  %v270_v12 = vld [vmem:[%s2180_s13 + $0x14] sm:$0x1] }
  0x21   : > { %269 = vst [vmem:[%s2186_s15 + $0x9] sm:$0x1] %v268_v11  ;;  %v272_v13 = vld [vmem:[%s2180_s13 + $0x16] sm:$0x1]  ;;  %v274_v14 = vld [vmem:[%s2180_s13 + $0x18] sm:$0x1] }
  0x22   : > { %271 = vst [vmem:[%s2186_s15 + $0xa] sm:$0x1] %v270_v12  ;;  %273 = vst [vmem:[%s2186_s15 + $0xb] sm:$0x1] %v272_v13  ;;  %v276_v15 = vld [vmem:[%s2180_s13 + $0x1a] sm:$0x1] }
  0x23   : > { %275 = vst [vmem:[%s2186_s15 + $0xc] sm:$0x1] %v274_v14  ;;  %v278_v16 = vld [vmem:[%s2180_s13 + $0x1c] sm:$0x1]  ;;  %v280_v17 = vld [vmem:[%s2180_s13 + $0x1e] sm:$0x1] }
  0x24   : > { %277 = vst [vmem:[%s2186_s15 + $0xd] sm:$0x1] %v276_v15  ;;  %279 = vst [vmem:[%s2186_s15 + $0xe] sm:$0x1] %v278_v16  ;;  %v282_v18 = vld [vmem:[%s2180_s13 + $0x20] sm:$0x1] }
  0x25   : > { %281 = vst [vmem:[%s2186_s15 + $0xf] sm:$0x1] %v280_v17  ;;  %v284_v19 = vld [vmem:[%s2180_s13 + $0x22] sm:$0x1]  ;;  %v286_v20 = vld [vmem:[%s2180_s13 + $0x24] sm:$0x1] }
  0x26   : > { %283 = vst [vmem:[%s2186_s15 + $0x10] sm:$0x1] %v282_v18  ;;  %285 = vst [vmem:[%s2186_s15 + $0x11] sm:$0x1] %v284_v19  ;;  %v288_v21 = vld [vmem:[%s2180_s13 + $0x26] sm:$0x1] }
  0x27   : > { %287 = vst [vmem:[%s2186_s15 + $0x12] sm:$0x1] %v286_v20  ;;  %v290_v22 = vld [vmem:[%s2180_s13 + $0x28] sm:$0x1]  ;;  %v292_v23 = vld [vmem:[%s2180_s13 + $0x2a] sm:$0x1] }
  0x28   : > { %289 = vst [vmem:[%s2186_s15 + $0x13] sm:$0x1] %v288_v21  ;;  %291 = vst [vmem:[%s2186_s15 + $0x14] sm:$0x1] %v290_v22  ;;  %v294_v24 = vld [vmem:[%s2180_s13 + $0x2c] sm:$0x1] }
  0x29   : > { %293 = vst [vmem:[%s2186_s15 + $0x15] sm:$0x1] %v292_v23  ;;  %v296_v25 = vld [vmem:[%s2180_s13 + $0x2e] sm:$0x1]  ;;  %v298_v26 = vld [vmem:[%s2180_s13 + $0x30] sm:$0x1] }
  0x2a   : > { %295 = vst [vmem:[%s2186_s15 + $0x16] sm:$0x1] %v294_v24  ;;  %297 = vst [vmem:[%s2186_s15 + $0x17] sm:$0x1] %v296_v25  ;;  %v300_v27 = vld [vmem:[%s2180_s13 + $0x32] sm:$0x1] }
  0x2b   : > { %299 = vst [vmem:[%s2186_s15 + $0x18] sm:$0x1] %v298_v26  ;;  %v302_v28 = vld [vmem:[%s2180_s13 + $0x34] sm:$0x1]  ;;  %v304_v29 = vld [vmem:[%s2180_s13 + $0x36] sm:$0x1] }
  0x2c   : > { %301 = vst [vmem:[%s2186_s15 + $0x19] sm:$0x1] %v300_v27  ;;  %303 = vst [vmem:[%s2186_s15 + $0x1a] sm:$0x1] %v302_v28  ;;  %v306_v30 = vld [vmem:[%s2180_s13 + $0x38] sm:$0x1] }
  0x2d   : > { %305 = vst [vmem:[%s2186_s15 + $0x1b] sm:$0x1] %v304_v29  ;;  %v308_v31 = vld [vmem:[%s2180_s13 + $0x3a] sm:$0x1]  ;;  %v310_v32 = vld [vmem:[%s2180_s13 + $0x3c] sm:$0x1] }
  0x2e   : > { %307 = vst [vmem:[%s2186_s15 + $0x1c] sm:$0x1] %v306_v30  ;;  %309 = vst [vmem:[%s2186_s15 + $0x1d] sm:$0x1] %v308_v31  ;;  %v312_v33 = vld [vmem:[%s2180_s13 + $0x3e] sm:$0x1] }
  0x2f   : > { %311 = vst [vmem:[%s2186_s15 + $0x1e] sm:$0x1] %v310_v32  ;;  %313 = vst [vmem:[%s2186_s15 + $0x1f] sm:$0x1] %v312_v33 }
  0x30 PF: > { %p1871_p7 = scmp.ge.s32.totalorder %s2093_s20, 1  ;;  %p405_p8 = scmp.lt.s32.totalorder %s2093_s20, 3 }
  0x32   : > { %p406_p9 = pnand %p1871_p7, %p405_p8 }
  0x33   : > { %v1877_v34 = vld [vmem:[%s2694_s3 + $0x2] ss:$0 sm:$0xff] (!%p406_p9)  ;;  %v1875_v35 = vld [vmem:[%s2694_s3] ss:$0 sm:$0xff] (!%p406_p9)  ;;  %v2095_v36 = vmov (!%p406_p9), 0   ;;  %s2431_s20 = sand.u32 (!%p406_p9), 1, %s2085_s18  }
  0x34   : > { %409 = sbr.rel (%p406_p9) target bundleno = 374 (0x176), region = 111  ;;  %2002 = vset.pattern.permute.xlu1 (!%p406_p9), %v2095_v36  ;;  %2001 = vset.pattern.permute.xlu0 (!%p406_p9), %v2095_v36  ;;  %v1878_v37 = vld [vmem:[%s2694_s3 + $0x3] ss:$0 sm:$0xff] (!%p406_p9)  ;;  %v1876_v38 = vld [vmem:[%s2694_s3 + $0x1] ss:$0 sm:$0xff] (!%p406_p9)  ;;  %s1872_s8 = sshll.u32 (!%p406_p9), %s2431_s20, 4 }
  0x35   : > { %669 = vperm.xlu1 (!%p406_p9), %2002, %v1877_v34   ;;  %661 = vperm.xlu0 (!%p406_p9), %2001, %v1875_v35   ;;  %v1880_v39 = vld [vmem:[%s2694_s3 + $0x5] ss:$0 sm:$0xff] (!%p406_p9)  ;;  %v1879_v40 = vld [vmem:[%s2694_s3 + $0x4] ss:$0 sm:$0xff] (!%p406_p9)  ;;  %v1882_v41 = vld [vmem:[%s2694_s3 + $0x7] ss:$0 sm:$0xff] (!%p406_p9) }
  0x36   : > { %v1881_v42 = vld [vmem:[%s2694_s3 + $0x6] ss:$0 sm:$0xff] (!%p406_p9)  ;;  %v1884_v43 = vld [vmem:[%s2694_s3 + $0x9] ss:$0 sm:$0xff] (!%p406_p9)  ;;  %v1883_v44 = vld [vmem:[%s2694_s3 + $0x8] ss:$0 sm:$0xff] (!%p406_p9) }
  0x37   : > { %v1886_v45 = vld [vmem:[%s2694_s3 + $0xb] ss:$0 sm:$0xff] (!%p406_p9)  ;;  %v1885_v46 = vld [vmem:[%s2694_s3 + $0xa] ss:$0 sm:$0xff] (!%p406_p9)  ;;  %v1888_v47 = vld [vmem:[%s2694_s3 + $0xd] ss:$0 sm:$0xff] (!%p406_p9) }
  0x38   : > { %v1887_v48 = vld [vmem:[%s2694_s3 + $0xc] ss:$0 sm:$0xff] (!%p406_p9)  ;;  %v1890_v49 = vld [vmem:[%s2694_s3 + $0xf] ss:$0 sm:$0xff] (!%p406_p9)  ;;  %v1889_v50 = vld [vmem:[%s2694_s3 + $0xe] ss:$0 sm:$0xff] (!%p406_p9) }
  0x39   : > { %673 = vperm.xlu1 (!%p406_p9), %2002, %v1878_v37   ;;  %665 = vperm.xlu0 (!%p406_p9), %2001, %v1876_v38   ;;  %v1892_v51 = vld [vmem:[%s2694_s3 + $0x11] ss:$0 sm:$0xff] (!%p406_p9)  ;;  %v1891_v52 = vld [vmem:[%s2694_s3 + $0x10] ss:$0 sm:$0xff] (!%p406_p9)  ;;  %v1894_v53 = vld [vmem:[%s2694_s3 + $0x13] ss:$0 sm:$0xff] (!%p406_p9) }
  0x3a   : > { %v1893_v54 = vld [vmem:[%s2694_s3 + $0x12] ss:$0 sm:$0xff] (!%p406_p9)  ;;  %v1908_v55 = vld [vmem:[%s2695_s4 + $0x1] ss:$0 sm:$0xff] (!%p406_p9)  ;;  %v1907_v56 = vld [vmem:[%s2695_s4] ss:$0 sm:$0xff] (!%p406_p9) }
  0x3b   : > { %v1910_v57 = vld [vmem:[%s2695_s4 + $0x3] ss:$0 sm:$0xff]  ;;  %v1909_v58 = vld [vmem:[%s2695_s4 + $0x2] ss:$0 sm:$0xff]  ;;  %v1912_v59 = vld [vmem:[%s2695_s4 + $0x5] ss:$0 sm:$0xff] }
  0x3c   : > { %v1911_v60 = vld [vmem:[%s2695_s4 + $0x4] ss:$0 sm:$0xff]  ;;  %v1914_v61 = vld [vmem:[%s2695_s4 + $0x7] ss:$0 sm:$0xff]  ;;  %v1913_v62 = vld [vmem:[%s2695_s4 + $0x6] ss:$0 sm:$0xff] }
  0x3d   : > { %681 = vperm.xlu1 %2002, %v1880_v39   ;;  %677 = vperm.xlu0 %2001, %v1879_v40   ;;  %v1916_v63 = vld [vmem:[%s2695_s4 + $0x9] ss:$0 sm:$0xff]  ;;  %v1915_v0 = vld [vmem:[%s2695_s4 + $0x8] ss:$0 sm:$0xff]  ;;  %v1918_v1 = vld [vmem:[%s2695_s4 + $0xb] ss:$0 sm:$0xff] }
  0x3e   : > { %v1917_v2 = vld [vmem:[%s2695_s4 + $0xa] ss:$0 sm:$0xff]  ;;  %v1920_v3 = vld [vmem:[%s2695_s4 + $0xd] ss:$0 sm:$0xff]  ;;  %v1919_v4 = vld [vmem:[%s2695_s4 + $0xc] ss:$0 sm:$0xff] }
  0x3f   : > { %v1922_v5 = vld [vmem:[%s2695_s4 + $0xf] ss:$0 sm:$0xff]  ;;  %v1921_v6 = vld [vmem:[%s2695_s4 + $0xe] ss:$0 sm:$0xff]  ;;  %v1924_v7 = vld [vmem:[%s2695_s4 + $0x11] ss:$0 sm:$0xff] }
  0x40   : > { %v1923_v8 = vld [vmem:[%s2695_s4 + $0x10] ss:$0 sm:$0xff]  ;;  %v1925_v9 = vld [vmem:[%s2695_s4 + $0x12] ss:$0 sm:$0xff]  ;;  %v1895_v10 = vld [vmem:[%s2694_s3 + $0x14] ss:$0 sm:$0xff] }
  0x41   : > { %689 = vperm.xlu1 %2002, %v1882_v41   ;;  %685 = vperm.xlu0 %2001, %v1881_v42   ;;  %v1926_v11 = vld [vmem:[%s2695_s4 + $0x13] ss:$0 sm:$0xff]  ;;  %v1896_v12 = vld [vmem:[%s2694_s3 + $0x15] ss:$0 sm:$0xff]  ;;  %v1927_v13 = vld [vmem:[%s2695_s4 + $0x14] ss:$0 sm:$0xff] }
  0x42   : > { %v1897_v14 = vld [vmem:[%s2694_s3 + $0x16] ss:$0 sm:$0xff]  ;;  %v1928_v15 = vld [vmem:[%s2695_s4 + $0x15] ss:$0 sm:$0xff]  ;;  %v1898_v16 = vld [vmem:[%s2694_s3 + $0x17] ss:$0 sm:$0xff] }
  0x43   : > { %v1929_v17 = vld [vmem:[%s2695_s4 + $0x16] ss:$0 sm:$0xff]  ;;  %v1899_v18 = vld [vmem:[%s2694_s3 + $0x18] ss:$0 sm:$0xff]  ;;  %v1930_v19 = vld [vmem:[%s2695_s4 + $0x17] ss:$0 sm:$0xff] }
  0x44   : > { %v1900_v20 = vld [vmem:[%s2694_s3 + $0x19] ss:$0 sm:$0xff]  ;;  %v1931_v21 = vld [vmem:[%s2695_s4 + $0x18] ss:$0 sm:$0xff]  ;;  %v1901_v22 = vld [vmem:[%s2694_s3 + $0x1a] ss:$0 sm:$0xff] }
  0x45   : > { %697 = vperm.xlu1 %2002, %v1884_v43   ;;  %693 = vperm.xlu0 %2001, %v1883_v44   ;;  %v1932_v23 = vld [vmem:[%s2695_s4 + $0x19] ss:$0 sm:$0xff]  ;;  %v1902_v24 = vld [vmem:[%s2694_s3 + $0x1b] ss:$0 sm:$0xff]  ;;  %v1933_v25 = vld [vmem:[%s2695_s4 + $0x1a] ss:$0 sm:$0xff] }
  0x46   : > { %v1903_v26 = vld [vmem:[%s2694_s3 + $0x1c] ss:$0 sm:$0xff]  ;;  %v1934_v27 = vld [vmem:[%s2695_s4 + $0x1b] ss:$0 sm:$0xff]  ;;  %v1904_v28 = vld [vmem:[%s2694_s3 + $0x1d] ss:$0 sm:$0xff] }
  0x47   : > { %v1935_v29 = vld [vmem:[%s2695_s4 + $0x1c] ss:$0 sm:$0xff]  ;;  %v1905_v30 = vld [vmem:[%s2694_s3 + $0x1e] ss:$0 sm:$0xff]  ;;  %v1936_v31 = vld [vmem:[%s2695_s4 + $0x1d] ss:$0 sm:$0xff] }
  0x48   : > { %v1906_v32 = vld [vmem:[%s2694_s3 + $0x1f] ss:$0 sm:$0xff]  ;;  %v1937_v34 = vld [vmem:[%s2695_s4 + $0x1e] ss:$0 sm:$0xff]  ;;  %s414_s12 = scalar_lea.vmem [#allocation2], %s1872_s8  ;;  %s1873_s13 = sshll.u32 %s2431_s20, 5 }
  0x49   : > { %705 = vperm.xlu1 %2002, %v1886_v45   ;;  %701 = vperm.xlu0 %2001, %v1885_v46   ;;  %v1938_v33 = vld [vmem:[%s2695_s4 + $0x1f] ss:$0 sm:$0xff]  ;;  %v2446_v35 = vld [vmem:[%s414_s12] sm:$0x3f]  ;;  %v2448_v36 = vld [vmem:[%s414_s12 + $0x8] sm:$0x3f] }
  0x4a   : > { %v457_v38 = vmul.f32 %v2446_v35, %v2446_v35  ;;  %v458_v39 = vmul.f32 %v2448_v36, %v2448_v36  ;;  %vm1268_vm2 = vcmask 1045504   ;;  %s2492_s14 = scalar_lea.vmem [#allocation3], %s1873_s13  ;;  %p452_p10 = scmp.lt.s32.totalorder %s2142_s21, 1  ;;  %vm1692_vm3 = vcmask 1040384  }
  0x4b   : > { %s1874_s24 = sshll.u32 %s2431_s20, 3  ;;  %vm1694_vm4 = vcmask 1041408   ;;  %vm1696_vm5 = vcmask 1042432   ;;  %s1973_s28 = sshll.u32 (%p2161_p5), %s2142_s21, 2 }
  0x4c   : > { %v459_v41 = vadd.f32 %v458_v39, %v457_v38  ;;  %s453_s15 = scalar_select %p452_p10, %s2142_s21, 1 }
  0x4d   : > { %713 = vperm.xlu1 %2002, %v1888_v47   ;;  %709 = vperm.xlu0 %2001, %v1887_v48   ;;  %s451_s26 = scalar_lea.vmem [#allocation4], %s1874_s24  ;;  %s1738_s30 = scalar_lea.vmem (%p2161_p5), %s2696_s5, %s1973_s28 }
  0x4e   : > { %v460_v44 = vadd.f32 1e-06, %v459_v41  ;;  %s454_s23 = scalar_lea.vmem %s2693_s2, %s453_s15 }
  0x50   : > { %2003 = vrsqrt.f32 %v460_v44  ;;  %vm463_vm0 = vcmp.eq.f32.partialorder %v460_v44, inf  ;;  %vm465_vm1 = vcmp.eq.f32.partialorder %v460_v44, 0.0 }
  0x51   : > { %721 = vperm.xlu1 %2002, %v1890_v49   ;;  %717 = vperm.xlu0 %2001, %v1889_v50  }
  0x55   : > { %729 = vperm.xlu1 %2002, %v1892_v51   ;;  %725 = vperm.xlu0 %2001, %v1891_v52  }
  0x59   : > { %737 = vperm.xlu1 %2002, %v1894_v53   ;;  %733 = vperm.xlu0 %2001, %v1893_v54  }
  0x5a   : > { %v2004_v53 = vpop.eup %2003 }
  0x5d   : > { %1049 = vperm.xlu1 %2002, %v1908_v55   ;;  %1045 = vperm.xlu0 %2001, %v1907_v56   ;;  %v462_v56 = vmul.f32 %v2004_v53, %v460_v44  ;;  %v1939_v53 = vld [vmem:[%s2492_s14] ss:$0 sm:$0xff] }
  0x61   : > { %1057 = vperm.xlu1 %2002, %v1910_v57   ;;  %1053 = vperm.xlu0 %2001, %v1909_v58   ;;  %v466_v57 = vand.u32 2147483648, %v460_v44 }
  0x65   : > { %1065 = vperm.xlu1 %2002, %v1912_v59   ;;  %1061 = vperm.xlu0 %2001, %v1911_v60   ;;  %v464_v60 = vsel %vm463_vm0, %v460_v44, %v462_v56 }
  0x69   : > { %1073 = vperm.xlu1 %2002, %v1914_v61   ;;  %1069 = vperm.xlu0 %2001, %v1913_v62   ;;  %v2468_v61 = vsel %vm465_vm1, %v466_v57, %v464_v60 }
  0x6d   : > { %1081 = vperm.xlu1 %2002, %v1916_v63   ;;  %1077 = vperm.xlu0 %2001, %v1915_v0  }
  0x71   : > { %1089 = vperm.xlu1 %2002, %v1918_v1   ;;  %1085 = vperm.xlu0 %2001, %v1917_v2  }
  0x75   : > { %1097 = vperm.xlu1 %2002, %v1920_v3   ;;  %1093 = vperm.xlu0 %2001, %v1919_v4  }
  0x79   : > { %1105 = vperm.xlu1 %2002, %v1922_v5   ;;  %1101 = vperm.xlu0 %2001, %v1921_v6  }
  0x7d   : > { %1113 = vperm.xlu1 %2002, %v1924_v7   ;;  %1109 = vperm.xlu0 %2001, %v1923_v8  }
  0x81   : > { %1117 = vperm.xlu1 %2002, %v1925_v9   ;;  %741 = vperm.xlu0 %2001, %v1895_v10  }
  0x85   : > { %1121 = vperm.xlu1 %2002, %v1926_v11   ;;  %745 = vperm.xlu0 %2001, %v1896_v12  }
  0x89   : > { %1125 = vperm.xlu1 %2002, %v1927_v13   ;;  %749 = vperm.xlu0 %2001, %v1897_v14  }
  0x8d   : > { %1129 = vperm.xlu1 %2002, %v1928_v15   ;;  %753 = vperm.xlu0 %2001, %v1898_v16  }
  0x91   : > { %1133 = vperm.xlu1 %2002, %v1929_v17   ;;  %757 = vperm.xlu0 %2001, %v1899_v18  }
  0x95   : > { %1137 = vperm.xlu1 %2002, %v1930_v19   ;;  %761 = vperm.xlu0 %2001, %v1900_v20  }
  0x99   : > { %1141 = vperm.xlu1 %2002, %v1931_v21   ;;  %765 = vperm.xlu0 %2001, %v1901_v22  }
  0x9d   : > { %1145 = vperm.xlu1 %2002, %v1932_v23   ;;  %769 = vperm.xlu0 %2001, %v1902_v24  }
  0xa1   : > { %1149 = vperm.xlu1 %2002, %v1933_v25   ;;  %773 = vperm.xlu0 %2001, %v1903_v26  }
  0xa5   : > { %1153 = vperm.xlu1 %2002, %v1934_v27   ;;  %777 = vperm.xlu0 %2001, %v1904_v28  }
  0xa9   : > { %1157 = vperm.xlu1 %2002, %v1935_v29   ;;  %781 = vperm.xlu0 %2001, %v1905_v30  }
  0xad   : > { %1161 = vperm.xlu1 %2002, %v1936_v31   ;;  %785 = vperm.xlu0 %2001, %v1906_v32  }
  0xb1   : > { %1169 = vperm.xlu1 %2002, %v1938_v33   ;;  %1165 = vperm.xlu0 %2001, %v1937_v34  }
  0xb4   : > { %v670_v37 = vpop.permute.xlu1 %669  ;;  %v662_v40 = vpop.permute.xlu0 %661 }
  0xb5   : > { %v788_v0 = vsub.f32 %v2468_v61, %v662_v40  ;;  %v790_v4 = vsub.f32 %v2468_v61, %v670_v37 }
  0xb7   : > { %v820_v5 = vmul.f32 %v788_v0, %v788_v0  ;;  %v822_v14 = vmul.f32 %v790_v4, %v790_v4 }
  0xb8   : > { %v674_v42 = vpop.permute.xlu1 %673  ;;  %v666_v43 = vpop.permute.xlu0 %665 }
  0xb9   : > { %v789_v1 = vsub.f32 %v2468_v61, %v666_v43  ;;  %v791_v6 = vsub.f32 %v2468_v61, %v674_v42 }
  0xbb   : > { %v821_v7 = vmul.f32 %v789_v1, %v789_v1  ;;  %v823_v15 = vmul.f32 %v791_v6, %v791_v6 }
  0xbc   : > { %v682_v45 = vpop.permute.xlu1 %681  ;;  %v678_v46 = vpop.permute.xlu0 %677 }
  0xbd   : > { %v793_v12 = vsub.f32 %v2468_v61, %v682_v45  ;;  %v792_v13 = vsub.f32 %v2468_v61, %v678_v46 }
  0xbf   : > { %v825_v22 = vmul.f32 %v793_v12, %v793_v12  ;;  %v824_v23 = vmul.f32 %v792_v13, %v792_v13 }
  0xc0   : > { %v690_v47 = vpop.permute.xlu1 %689  ;;  %v686_v48 = vpop.permute.xlu0 %685 }
  0xc1   : > { %v795_v24 = vsub.f32 %v2468_v61, %v690_v47  ;;  %v794_v25 = vsub.f32 %v2468_v61, %v686_v48 }
  0xc3   : > { %v827_v32 = vmul.f32 %v795_v24, %v795_v24  ;;  %v826_v33 = vmul.f32 %v794_v25, %v794_v25 }
  0xc4   : > { %v2454_v49 = vpop.permute.xlu1 %697  ;;  %v694_v50 = vpop.permute.xlu0 %693 }
  0xc5   : > { %v796_v38 = vsub.f32 %v2468_v61, %v694_v50  ;;  %v797_v43 = vsub.f32 %v2468_v61, %v2454_v49  ;;  %v1940_v50 = vld [vmem:[%s2492_s14 + $0x1] ss:$0 sm:$0xff] }
  0xc7   : > { %v828_v48 = vmul.f32 %v796_v38, %v796_v38  ;;  %v829_v1 = vmul.f32 %v797_v43, %v797_v43 }
  0xc8   : > { %v2456_v51 = vpop.permute.xlu1 %705  ;;  %v2458_v52 = vpop.permute.xlu0 %701 }
  0xc9   : > { %v798_v45 = vsub.f32 %v2468_v61, %v2458_v52 }
  0xcc   : > { %v2460_v54 = vpop.permute.xlu1 %713  ;;  %v2462_v55 = vpop.permute.xlu0 %709 }
  0xd0   : > { %v2464_v58 = vpop.permute.xlu1 %721  ;;  %v2466_v59 = vpop.permute.xlu0 %717 }
  0xd4   : > { %v2470_v62 = vpop.permute.xlu1 %729  ;;  %v2472_v63 = vpop.permute.xlu0 %725 }
  0xd8   : > { %v2476_v2 = vpop.permute.xlu1 %737  ;;  %v2478_v3 = vpop.permute.xlu0 %733 }
  0xdc   : > { %v1050_v8 = vpop.permute.xlu1 %1049  ;;  %v1046_v9 = vpop.permute.xlu0 %1045 }
  0xdd   : > { %v1173_v10 = vmul.f32 %v1050_v8, %v821_v7  ;;  %v1172_v11 = vmul.f32 %v1046_v9, %v820_v5  ;;  %v830_v5 = vmul.f32 %v798_v45, %v798_v45  ;;  %v1941_v8 = vld [vmem:[%s2492_s14 + $0x2] ss:$0 sm:$0xff] }
  0xdf   : > { %v1206_v16 = vmul.f32 1.442695, %v1173_v10  ;;  %v1204_v17 = vmul.f32 1.442695, %v1172_v11 }
  0xe0   : > { %v1058_v18 = vpop.permute.xlu1 %1057  ;;  %v1054_v19 = vpop.permute.xlu0 %1053 }
  0xe1   : > { %2005 = vpow2.f32 %v1206_v16  ;;  %v1175_v20 = vmul.f32 %v1058_v18, %v823_v15  ;;  %v1174_v21 = vmul.f32 %v1054_v19, %v822_v14  ;;  %v799_v15 = vsub.f32 %v2468_v61, %v2456_v51 }
  0xe2   : > { %2007 = vpow2.f32 %v1204_v17 }
  0xe3   : > { %v1210_v26 = vmul.f32 1.442695, %v1175_v20  ;;  %v1208_v27 = vmul.f32 1.442695, %v1174_v21  ;;  %v800_v21 = vsub.f32 %v2468_v61, %v2462_v55 }
  0xe4   : > { %v1066_v28 = vpop.permute.xlu1 %1065  ;;  %v1062_v29 = vpop.permute.xlu0 %1061 }
  0xe5   : > { %2009 = vpow2.f32 %v1210_v26  ;;  %v1177_v30 = vmul.f32 %v1066_v28, %v825_v22  ;;  %v1176_v31 = vmul.f32 %v1062_v29, %v824_v23  ;;  %v1942_v29 = vld [vmem:[%s2492_s14 + $0x3] ss:$0 sm:$0xff] }
  0xe6   : > { %2011 = vpow2.f32 %v1208_v27 }
  0xe7   : > { %v1214_v34 = vmul.f32 1.442695, %v1177_v30  ;;  %v1212_v37 = vmul.f32 1.442695, %v1176_v31  ;;  %v831_v31 = vmul.f32 %v799_v15, %v799_v15 }
  0xe8   : > { %v1074_v39 = vpop.permute.xlu1 %1073  ;;  %v1070_v40 = vpop.permute.xlu0 %1069 }
  0xe9   : > { %2013 = vpow2.f32 %v1214_v34  ;;  %v1179_v41 = vmul.f32 %v1074_v39, %v827_v32  ;;  %v1178_v42 = vmul.f32 %v1070_v40, %v826_v33  ;;  %v832_v34 = vmul.f32 %v800_v21, %v800_v21  ;;  %v1943_v39 = vld [vmem:[%s2492_s14 + $0x4] ss:$0 sm:$0xff] }
  0xea   : > { %2015 = vpow2.f32 %v1212_v37 }
  0xeb   : > { %v2006_v44 = vpop.eup %2005  ;;  %v1216_v46 = vmul.f32 1.442695, %v1178_v42  ;;  %v1218_v56 = vmul.f32 1.442695, %v1179_v41 }
  0xec   : > { %v2008_v47 = vpop.eup %2007  ;;  %v1082_v57 = vpop.permute.xlu1 %1081  ;;  %v1270_v49 = vsel %vm1268_vm2, %v2006_v44, 0.0  ;;  %v1557_v6 = vmul.f32 %v2006_v44, %v1940_v50 }
  0xed   : > { %v1078_v60 = vpop.permute.xlu0 %1077  ;;  %v1269_v0 = vsel %vm1268_vm2, %v2008_v47, 0.0  ;;  %2017 = vpow2.f32 %v1216_v46  ;;  %v1556_v7 = vmul.f32 %v2008_v47, %v1939_v53  ;;  %v1181_v11 = vmul.f32 %v1082_v57, %v829_v1 }
  0xee   : > { %v1180_v52 = vmul.f32 %v1078_v60, %v828_v48  ;;  %v1271_v10 = vadd.f32 %v1270_v49, %v1269_v0  ;;  %2019 = vpow2.f32 %v1218_v56  ;;  %v1589_v24 = vsel %vm1268_vm2, %v1557_v6, 0.0 }
  0xef   : > { %v2010_v4 = vpop.eup %2009  ;;  %v1588_v25 = vsel %vm1268_vm2, %v1556_v7, 0.0  ;;  %v1222_v26 = vmul.f32 1.442695, %v1181_v11  ;;  %v801_v46 = vsub.f32 %v2468_v61, %v2460_v54  ;;  %v802_v49 = vsub.f32 %v2468_v61, %v2466_v59  ;;  %v1944_v54 = vld [vmem:[%s2492_s14 + $0x5] ss:$0 sm:$0xff] }
  0xf0   : > { %v2012_v9 = vpop.eup %2011  ;;  %v1220_v12 = vmul.f32 1.442695, %v1180_v52  ;;  %v1090_v13 = vpop.permute.xlu1 %1089  ;;  %v1274_v22 = vsel %vm1268_vm2, %v2010_v4, 0.0  ;;  %v1590_v37 = vadd.f32 %v1589_v24, %v1588_v25  ;;  %v1559_v41 = vmul.f32 %v2010_v4, %v1942_v29  ;;  %v1945_v11 = vld [vmem:[%s2492_s14 + $0x6] ss:$0 sm:$0xff] }
  0xf1   : > { %v1086_v14 = vpop.permute.xlu0 %1085  ;;  %v1272_v16 = vsel %vm1268_vm2, %v2012_v9, 0.0  ;;  %v1558_v18 = vmul.f32 %v2012_v9, %v1941_v8  ;;  %v1183_v43 = vmul.f32 %v1090_v13, %v831_v31  ;;  %v833_v7 = vmul.f32 %v801_v46, %v801_v46 }
  0xf2   : > { %v1273_v17 = vadd.f32 %v1272_v16, %v1271_v10  ;;  %2021 = vpow2.f32 %v1220_v12  ;;  %v1182_v19 = vmul.f32 %v1086_v14, %v830_v5  ;;  %v1593_v0 = vsel %vm1268_vm2, %v1559_v41, 0.0 }
  0xf3   : > { %v2014_v20 = vpop.eup %2013  ;;  %v1591_v32 = vsel %vm1268_vm2, %v1558_v18, 0.0  ;;  %2023 = vpow2.f32 %v1222_v26  ;;  %v1226_v1 = vmul.f32 1.442695, %v1183_v43  ;;  %v834_v13 = vmul.f32 %v802_v49, %v802_v49 }
  0xf4   : > { %v2016_v23 = vpop.eup %2015  ;;  %v1275_v51 = vadd.f32 %v1274_v22, %v1273_v17  ;;  %v1098_v27 = vpop.permute.xlu1 %1097  ;;  %v1224_v55 = vmul.f32 1.442695, %v1182_v19  ;;  %v1278_v38 = vsel %vm1268_vm2, %v2014_v20, 0.0  ;;  %v1592_v47 = vadd.f32 %v1591_v32, %v1590_v37 }
  0xf5   : > { %v1094_v28 = vpop.permute.xlu0 %1093  ;;  %v1276_v30 = vsel %vm1268_vm2, %v2016_v23, 0.0  ;;  %v1560_v53 = vmul.f32 %v2016_v23, %v1943_v39  ;;  %v1561_v59 = vmul.f32 %v2014_v20, %v1944_v54  ;;  %v1185_v14 = vmul.f32 %v1098_v27, %v833_v7 }
  0xf6   : > { %v1277_v33 = vadd.f32 %v1276_v30, %v1275_v51  ;;  %2025 = vpow2.f32 %v1224_v55  ;;  %v1184_v57 = vmul.f32 %v1094_v28, %v832_v34  ;;  %v1594_v5 = vadd.f32 %v1593_v0, %v1592_v47  ;;  %v1946_v28 = vld [vmem:[%s2492_s14 + $0x7] ss:$0 sm:$0xff]  ;;  %v1947_v55 = vld [vmem:[%s2492_s14 + $0x8] ss:$0 sm:$0xff] }
  0xf7   : > { %v2018_v40 = vpop.eup %2017  ;;  %v1595_v8 = vsel %vm1268_vm2, %v1560_v53, 0.0  ;;  %2027 = vpow2.f32 %v1226_v1  ;;  %v803_v17 = vsub.f32 %v2468_v61, %v2464_v58  ;;  %v804_v25 = vsub.f32 %v2468_v61, %v2472_v63 }
  0xf8   : > { %v1279_v42 = vadd.f32 %v1278_v38, %v1277_v33  ;;  %v1106_v44 = vpop.permute.xlu1 %1105  ;;  %v1280_v48 = vsel %vm1268_vm2, %v2018_v40, 0.0  ;;  %v2020_v50 = vpop.eup %2019  ;;  %v1228_v10 = vmul.f32 1.442695, %v1184_v57  ;;  %v1596_v18 = vadd.f32 %v1595_v8, %v1594_v5 }
  0xf9   : > { %v1102_v45 = vpop.permute.xlu0 %1101  ;;  %v1282_v6 = vsel %vm1268_vm2, %v2020_v50, 0.0  ;;  %v1562_v21 = vmul.f32 %v2018_v40, %v1945_v11  ;;  %v1597_v20 = vsel %vm1268_vm2, %v1561_v59, 0.0  ;;  %v1230_v51 = vmul.f32 1.442695, %v1185_v14 }
  0xfa   : > { %v1281_v56 = vadd.f32 %v1280_v48, %v1279_v42  ;;  %2029 = vpow2.f32 %v1228_v10  ;;  %v1186_v23 = vmul.f32 %v1102_v45, %v834_v13  ;;  %v1598_v29 = vadd.f32 %v1597_v20, %v1596_v18 }
  0xfb   : > { %v835_v30 = vmul.f32 %v803_v17, %v803_v17  ;;  %v1599_v31 = vsel %vm1268_vm2, %v1562_v21, 0.0  ;;  %v836_v37 = vmul.f32 %v804_v25, %v804_v25  ;;  %v1563_v38 = vmul.f32 %v2020_v50, %v1946_v28 }
  0xfc   : > { %v2022_v60 = vpop.eup %2021  ;;  %v2518_v52 = vpop.permute.xlu1 %1113  ;;  %v1283_v9 = vadd.f32 %v1282_v6, %v1281_v56  ;;  %v1232_v33 = vmul.f32 1.442695, %v1186_v23  ;;  %2031 = vpow2.f32 %v1230_v51  ;;  %v805_v41 = vsub.f32 %v2468_v61, %v2470_v62  ;;  %v1948_v62 = vld [vmem:[%s2492_s14 + $0x9] ss:$0 sm:$0xff] }
  0xfd   : > { %v1110_v4 = vpop.permute.xlu0 %1109  ;;  %v1284_v12 = vsel %vm1268_vm2, %v2022_v60, 0.0  ;;  %v2024_v19 = vpop.eup %2023  ;;  %v1187_v63 = vmul.f32 %v1106_v44, %v835_v30  ;;  %v1600_v42 = vadd.f32 %v1599_v31, %v1598_v29  ;;  %v1564_v45 = vmul.f32 %v2022_v60, %v1947_v55  ;;  %v1951_v30 = vld [vmem:[%s2492_s14 + $0xc] ss:$0 sm:$0xff] }
  0xfe   : > { %v1285_v22 = vadd.f32 %v1284_v12, %v1283_v9  ;;  %v1286_v58 = vsel %vm1268_vm2, %v2024_v19, 0.0  ;;  %2033 = vpow2.f32 %v1232_v33  ;;  %v1188_v47 = vmul.f32 %v1110_v4, %v836_v37 }
  0xff   : > { %v806_v48 = vsub.f32 %v2468_v61, %v2478_v3  ;;  %v1601_v50 = vsel %vm1268_vm2, %v1563_v38, 0.0  ;;  %v1234_v44 = vmul.f32 1.442695, %v1187_v63  ;;  %v807_v49 = vsub.f32 %v2468_v61, %v2476_v2  ;;  %v1949_v3 = vld [vmem:[%s2492_s14 + $0xa] ss:$0 sm:$0xff] }
 0x100   : > { %v1118_v15 = vpop.permute.xlu1 %1117  ;;  %v2026_v24 = vpop.eup %2025  ;;  %v1287_v32 = vadd.f32 %v1286_v58, %v1285_v22  ;;  %v1602_v0 = vadd.f32 %v1601_v50, %v1600_v42  ;;  %v837_v1 = vmul.f32 %v805_v41, %v805_v41  ;;  %v1603_v4 = vsel %vm1268_vm2, %v1564_v45, 0.0 }
 0x101   : > { %v742_v16 = vpop.permute.xlu0 %741  ;;  %v1288_v34 = vsel %vm1268_vm2, %v2026_v24, 0.0  ;;  %v2028_v43 = vpop.eup %2027  ;;  %v1236_v5 = vmul.f32 1.442695, %v1188_v47  ;;  %v838_v6 = vmul.f32 %v806_v48, %v806_v48  ;;  %v1565_v9 = vmul.f32 %v2024_v19, %v1948_v62 }
 0x102   : > { %v1289_v46 = vadd.f32 %v1288_v34, %v1287_v32  ;;  %v1290_v60 = vsel %vm1268_vm2, %v2028_v43, 0.0  ;;  %v808_v8 = vsub.f32 %v2468_v61, %v742_v16  ;;  %2035 = vpow2.f32 %v1234_v44 }
 0x103   : > { %v1189_v2 = vmul.f32 %v2518_v52, %v837_v1  ;;  %v839_v12 = vmul.f32 %v807_v49, %v807_v49  ;;  %v1604_v13 = vadd.f32 %v1603_v4, %v1602_v0  ;;  %v1190_v59 = vmul.f32 %v1118_v15, %v838_v6  ;;  %v1950_v52 = vld [vmem:[%s2492_s14 + $0xb] ss:$0 sm:$0xff] }
 0x104   : > { %v1122_v26 = vpop.permute.xlu1 %1121  ;;  %v2030_v53 = vpop.eup %2029  ;;  %v1291_v54 = vadd.f32 %v1290_v60, %v1289_v46  ;;  %v1566_v17 = vmul.f32 %v2026_v24, %v1949_v3  ;;  %2037 = vpow2.f32 %v1236_v5  ;;  %v840_v22 = vmul.f32 %v808_v8, %v808_v8  ;;  %v1952_v5 = vld [vmem:[%s2492_s14 + $0xd] ss:$0 sm:$0xff] }
 0x105   : > { %v746_v27 = vpop.permute.xlu0 %745  ;;  %v1292_v7 = vsel %vm1268_vm2, %v2030_v53, 0.0  ;;  %v1191_v16 = vmul.f32 %v1122_v26, %v839_v12  ;;  %v1605_v23 = vsel %vm1268_vm2, %v1565_v9, 0.0  ;;  %v1238_v25 = vmul.f32 1.442695, %v1189_v2 }
 0x106   : > { %v2549_v14 = vpop.eup %2031  ;;  %v1293_v18 = vadd.f32 %v1292_v7, %v1291_v54  ;;  %v809_v21 = vsub.f32 %v2468_v61, %v746_v27  ;;  %v1606_v28 = vadd.f32 %v1605_v23, %v1604_v13  ;;  %v1240_v29 = vmul.f32 1.442695, %v1190_v59 }
 0x107   : > { %v1294_v24 = vsel %vm1268_vm2, %v2549_v14, 0.0  ;;  %v1607_v27 = vsel %vm1268_vm2, %v1566_v17, 0.0  ;;  %v1567_v33 = vmul.f32 %v2028_v43, %v1950_v52  ;;  %v1242_v34 = vmul.f32 1.442695, %v1191_v16 }
 0x108   : > { %v1126_v39 = vpop.permute.xlu1 %1125  ;;  %v2552_v19 = vpop.eup %2033  ;;  %v1295_v26 = vadd.f32 %v1294_v24, %v1293_v18  ;;  %v841_v31 = vmul.f32 %v809_v21, %v809_v21  ;;  %2039 = vpow2.f32 %v1238_v25  ;;  %v1568_v42 = vmul.f32 %v2030_v53, %v1951_v30 }
 0x109   : > { %v750_v40 = vpop.permute.xlu0 %749  ;;  %v1192_v58 = vmul.f32 %v1126_v39, %v840_v22  ;;  %v1296_v55 = vsel %vm1268_vm2, %v2552_v19, 0.0  ;;  %v1608_v39 = vadd.f32 %v1607_v27, %v1606_v28  ;;  %2041 = vpow2.f32 %v1240_v29 }
 0x10a   : > { %v810_v20 = vsub.f32 %v2468_v61, %v750_v40  ;;  %v1297_v47 = vadd.f32 %v1296_v55, %v1295_v26  ;;  %v1609_v44 = vsel %vm1268_vm2, %v1567_v33, 0.0  ;;  %2043 = vpow2.f32 %v1242_v34  ;;  %v1954_v26 = vld [vmem:[%s2492_s14 + $0xf] ss:$0 sm:$0xff] }
 0x10b   : > { %v1244_v45 = vmul.f32 1.442695, %v1192_v58  ;;  %v1610_v1 = vadd.f32 %v1609_v44, %v1608_v39  ;;  %v1611_v4 = vsel %vm1268_vm2, %v1568_v42, 0.0  ;;  %v1569_v18 = vmul.f32 %v2549_v14, %v1952_v5  ;;  %v1955_v42 = vld [vmem:[%s2492_s14 + $0x10] ss:$0 sm:$0xff] }
 0x10c   : > { %v1130_v56 = vpop.permute.xlu1 %1129  ;;  %v842_v37 = vmul.f32 %v810_v20, %v810_v20  ;;  %v2565_v46 = vpop.eup %2035 }
 0x10d   : > { %v754_v57 = vpop.permute.xlu0 %753  ;;  %v1193_v38 = vmul.f32 %v1130_v56, %v841_v31  ;;  %v1298_v54 = vsel %vm1268_vm2, %v2565_v46, 0.0  ;;  %2045 = vpow2.f32 %v1244_v45  ;;  %v1612_v21 = vadd.f32 %v1611_v4, %v1610_v1 }
 0x10e   : > { %v811_v32 = vsub.f32 %v2468_v61, %v754_v57  ;;  %v2569_v56 = vpop.eup %2037  ;;  %v1299_v6 = vadd.f32 %v1298_v54, %v1297_v47  ;;  %v1613_v58 = vsel %vm1268_vm2, %v1569_v18, 0.0  ;;  %v1571_v39 = vmul.f32 %v2565_v46, %v1954_v26 }
 0x10f   : > { %v1246_v57 = vmul.f32 1.442695, %v1193_v38  ;;  %v1300_v9 = vsel %vm1268_vm2, %v2569_v56, 0.0  ;;  %v1614_v31 = vadd.f32 %v1613_v58, %v1612_v21  ;;  %v1572_v46 = vmul.f32 %v2569_v56, %v1955_v42  ;;  %v1957_v21 = vld [vmem:[%s2492_s14 + $0x12] ss:$0 sm:$0xff] }
 0x110   : > { %v1134_v10 = vpop.permute.xlu1 %1133  ;;  %v843_v48 = vmul.f32 %v811_v32, %v811_v32  ;;  %v1301_v16 = vadd.f32 %v1300_v9, %v1299_v6  ;;  %v1617_v4 = vsel %vm1268_vm2, %v1571_v39, 0.0  ;;  %v1956_v9 = vld [vmem:[%s2492_s14 + $0x11] ss:$0 sm:$0xff]  ;;  %v1961_v42 = vld [vmem:[%s2492_s14 + $0x16] ss:$0 sm:$0xff] }
 0x111   : > { %v758_v11 = vpop.permute.xlu0 %757  ;;  %v1194_v43 = vmul.f32 %v1134_v10, %v842_v37  ;;  %v1953_v10 = vld [vmem:[%s2492_s14 + $0xe] ss:$0 sm:$0xff]  ;;  %2047 = vpow2.f32 %v1246_v57 }
 0x112   : > { %v812_v63 = vsub.f32 %v2468_v61, %v758_v11  ;;  %v2581_v22 = vpop.eup %2039  ;;  %v1570_v20 = vmul.f32 %v2552_v19, %v1953_v10 }
 0x113   : > { %v1248_v3 = vmul.f32 1.442695, %v1194_v43  ;;  %v2583_v25 = vpop.eup %2041  ;;  %v1302_v27 = vsel %vm1268_vm2, %v2581_v22, 0.0 }
 0x114   : > { %v1138_v51 = vpop.permute.xlu1 %1137  ;;  %v844_v49 = vmul.f32 %v812_v63, %v812_v63  ;;  %v2587_v14 = vpop.eup %2043  ;;  %v1303_v32 = vadd.f32 %v1302_v27, %v1301_v16  ;;  %v1615_v55 = vsel %vm1268_vm2, %v1570_v20, 0.0  ;;  %v1304_v34 = vsel %vm1268_vm2, %v2583_v25, 0.0 }
 0x115   : > { %v762_v15 = vpop.permute.xlu0 %761  ;;  %v1195_v62 = vmul.f32 %v1138_v51, %v843_v48  ;;  %2049 = vpow2.f32 %v1248_v3  ;;  %v1306_v45 = vsel %vm1268_vm2, %v2587_v14, 0.0  ;;  %v1616_v43 = vadd.f32 %v1615_v55, %v1614_v31  ;;  %v1959_v31 = vld [vmem:[%s2492_s14 + $0x14] ss:$0 sm:$0xff] }
 0x116   : > { %v813_v50 = vsub.f32 %v2468_v61, %v762_v15  ;;  %v1573_v20 = vmul.f32 %v2581_v22, %v1956_v9 }
 0x117   : > { %v1250_v11 = vmul.f32 1.442695, %v1195_v62  ;;  %v2593_v33 = vpop.eup %2045 }
 0x118   : > { %v1142_v40 = vpop.permute.xlu1 %1141  ;;  %v845_v7 = vmul.f32 %v813_v50, %v813_v50  ;;  %v1305_v50 = vadd.f32 %v1304_v34, %v1303_v32  ;;  %v1308_v44 = vsel %vm1268_vm2, %v2593_v33, 0.0  ;;  %v1621_v22 = vsel %vm1268_vm2, %v1573_v20, 0.0  ;;  %v1967_v20 = vld [vmem:[%s2492_s14 + $0x1c] ss:$0 sm:$0xff] }
 0x119   : > { %v766_v41 = vpop.permute.xlu0 %765  ;;  %v1196_v8 = vmul.f32 %v1142_v40, %v844_v49  ;;  %2051 = vpow2.f32 %v1250_v11 }
 0x11a   : > { %v814_v53 = vsub.f32 %v2468_v61, %v766_v41 }
 0x11b   : > { %v1252_v23 = vmul.f32 1.442695, %v1196_v8  ;;  %v2603_v48 = vpop.eup %2047 }
 0x11c   : > { %v1146_v0 = vpop.permute.xlu1 %1145  ;;  %v846_v12 = vmul.f32 %v814_v53, %v814_v53  ;;  %v1310_v54 = vsel %vm1268_vm2, %v2603_v48, 0.0 }
 0x11d   : > { %v770_v60 = vpop.permute.xlu0 %769  ;;  %v1197_v13 = vmul.f32 %v1146_v0, %v845_v7  ;;  %2053 = vpow2.f32 %v1252_v23  ;;  %v1307_v0 = vadd.f32 %v1306_v45, %v1305_v50  ;;  %v1618_v7 = vadd.f32 %v1617_v4, %v1616_v43 }
 0x11e   : > { %v815_v2 = vsub.f32 %v2468_v61, %v770_v60 }
 0x11f   : > { %v1254_v28 = vmul.f32 1.442695, %v1197_v13  ;;  %v2608_v53 = vpop.eup %2049  ;;  %v1309_v8 = vadd.f32 %v1308_v44, %v1307_v0  ;;  %v1619_v13 = vsel %vm1268_vm2, %v1572_v46, 0.0 }
 0x120   : > { %v1150_v59 = vpop.permute.xlu1 %1149  ;;  %v847_v51 = vmul.f32 %v815_v2, %v815_v2  ;;  %v1312_v56 = vsel %vm1268_vm2, %v2608_v53, 0.0  ;;  %v1578_v46 = vmul.f32 %v2608_v53, %v1961_v42 }
 0x121   : > { %v774_v17 = vpop.permute.xlu0 %773  ;;  %v1198_v52 = vmul.f32 %v1150_v59, %v846_v12  ;;  %2055 = vpow2.f32 %v1254_v28  ;;  %v1311_v59 = vadd.f32 %v1310_v54, %v1309_v8  ;;  %v1620_v28 = vadd.f32 %v1619_v13, %v1618_v7  ;;  %v1964_v7 = vld [vmem:[%s2492_s14 + $0x19] ss:$0 sm:$0xff] }
 0x122   : > { %v816_v15 = vsub.f32 %v2468_v61, %v774_v17  ;;  %v1631_v9 = vsel %vm1268_vm2, %v1578_v46, 0.0 }
 0x123   : > { %v1256_v19 = vmul.f32 1.442695, %v1198_v52  ;;  %v2052_v3 = vpop.eup %2051 }
 0x124   : > { %v1154_v24 = vpop.permute.xlu1 %1153  ;;  %v848_v37 = vmul.f32 %v816_v15, %v816_v15  ;;  %v1313_v15 = vadd.f32 %v1312_v56, %v1311_v59 }
 0x125   : > { %v778_v29 = vpop.permute.xlu0 %777  ;;  %v1199_v30 = vmul.f32 %v1154_v24, %v847_v51  ;;  %2057 = vpow2.f32 %v1256_v19  ;;  %v1958_v51 = vld [vmem:[%s2492_s14 + $0x13] ss:$0 sm:$0xff] }
 0x126   : > { %v817_v38 = vsub.f32 %v2468_v61, %v778_v29  ;;  %v1575_v55 = vmul.f32 %v2587_v14, %v1958_v51 }
 0x127   : > { %v1258_v63 = vmul.f32 1.442695, %v1199_v30  ;;  %v2054_v12 = vpop.eup %2053  ;;  %v1574_v30 = vmul.f32 %v2583_v25, %v1957_v21 }
 0x128   : > { %v1158_v40 = vpop.permute.xlu1 %1157  ;;  %v849_v57 = vmul.f32 %v817_v38, %v817_v38  ;;  %v1316_v24 = vsel %vm1268_vm2, %v2054_v12, 0.0  ;;  %v1960_v38 = vld [vmem:[%s2492_s14 + $0x15] ss:$0 sm:$0xff] }
 0x129   : > { %v782_v41 = vpop.permute.xlu0 %781  ;;  %v1200_v47 = vmul.f32 %v1158_v40, %v848_v37  ;;  %2059 = vpow2.f32 %v1258_v63  ;;  %v1622_v37 = vadd.f32 %v1621_v22, %v1620_v28  ;;  %v1623_v25 = vsel %vm1268_vm2, %v1574_v30, 0.0 }
 0x12a   : > { %v818_v62 = vsub.f32 %v2468_v61, %v782_v41  ;;  %v1576_v41 = vmul.f32 %v2593_v33, %v1959_v31  ;;  %v1577_v14 = vmul.f32 %v2603_v48, %v1960_v38  ;;  %v1970_v38 = vld [vmem:[%s2492_s14 + $0x1f] ss:$0 sm:$0xff] }
 0x12b   : > { %v1260_v49 = vmul.f32 1.442695, %v1200_v47  ;;  %v2056_v52 = vpop.eup %2055  ;;  %v1625_v47 = vsel %vm1268_vm2, %v1575_v55, 0.0  ;;  %v1624_v44 = vadd.f32 %v1623_v25, %v1622_v37 }
 0x12c   : > { %v1162_v60 = vpop.permute.xlu1 %1161  ;;  %v850_v2 = vmul.f32 %v818_v62, %v818_v62  ;;  %v1318_v32 = vsel %vm1268_vm2, %v2056_v52, 0.0  ;;  %v1627_v62 = vsel %vm1268_vm2, %v1576_v41, 0.0  ;;  %v1629_v4 = vsel %vm1268_vm2, %v1577_v14, 0.0 }
 0x12d   : > { %v786_v1 = vpop.permute.xlu0 %785  ;;  %v1201_v5 = vmul.f32 %v1162_v60, %v849_v57  ;;  %2061 = vpow2.f32 %v1260_v49  ;;  %v1962_v57 = vld [vmem:[%s2492_s14 + $0x17] ss:$0 sm:$0xff]  ;;  %v1626_v0 = vadd.f32 %v1625_v47, %v1624_v44  ;;  %v1963_v60 = vld [vmem:[%s2492_s14 + $0x18] ss:$0 sm:$0xff]  ;;  %v1581_v59 = vmul.f32 %v2056_v52, %v1964_v7  ;;  %v1968_v52 = vld [vmem:[%s2492_s14 + $0x1d] ss:$0 sm:$0xff] }
 0x12e   : > { %v819_v6 = vsub.f32 %v2468_v61, %v786_v1  ;;  %v1314_v61 = vsel %vm1268_vm2, %v2052_v3, 0.0  ;;  %v1579_v48 = vmul.f32 %v2052_v3, %v1962_v57  ;;  %v1580_v56 = vmul.f32 %v2054_v12, %v1963_v60 }
 0x12f   : > { %v1262_v10 = vmul.f32 1.442695, %v1201_v5  ;;  %v2058_v27 = vpop.eup %2057  ;;  %v1315_v26 = vadd.f32 %v1314_v61, %v1313_v15  ;;  %v1637_v51 = vsel %vm1268_vm2, %v1581_v59, 0.0 }
 0x130   : > { %v851_v11 = vmul.f32 %v819_v6, %v819_v6  ;;  %v1170_v17 = vpop.permute.xlu1 %1169  ;;  %v1320_v63 = vsel %vm1268_vm2, %v2058_v27, 0.0  ;;  %v1628_v6 = vadd.f32 %v1627_v62, %v1626_v0  ;;  %v1633_v13 = vsel %vm1268_vm2, %v1579_v48, 0.0 }
 0x131   : > { %v1166_v18 = vpop.permute.xlu0 %1165  ;;  %2063 = vpow2.f32 %v1262_v10  ;;  %v1317_v34 = vadd.f32 %v1316_v24, %v1315_v26  ;;  %v1965_v10 = vld [vmem:[%s2492_s14 + $0x1a] ss:$0 sm:$0xff]  ;;  %v1635_v61 = vsel %vm1268_vm2, %v1580_v56, 0.0  ;;  %v1969_v26 = vld [vmem:[%s2492_s14 + $0x1e] ss:$0 sm:$0xff] }
 0x132   : > { %v1203_v16 = vmul.f32 %v1170_v17, %v851_v11  ;;  %v1202_v23 = vmul.f32 %v1166_v18, %v850_v2  ;;  %v1630_v2 = vadd.f32 %v1629_v4, %v1628_v6  ;;  %v1966_v18 = vld [vmem:[%s2492_s14 + $0x1b] ss:$0 sm:$0xff] }
 0x133   : > { %v2060_v19 = vpop.eup %2059  ;;  %v1319_v39 = vadd.f32 %v1318_v32, %v1317_v34 }
 0x134   : > { %v1266_v29 = vmul.f32 1.442695, %v1203_v16  ;;  %v1264_v58 = vmul.f32 1.442695, %v1202_v23  ;;  %v1322_v45 = vsel %vm1268_vm2, %v2060_v19, 0.0  ;;  %v1632_v17 = vadd.f32 %v1631_v9, %v1630_v2 }
 0x135   : > { %v1321_v43 = vadd.f32 %v1320_v63, %v1319_v39  ;;  %v1582_v16 = vmul.f32 %v2058_v27, %v1965_v10  ;;  %v1583_v15 = vmul.f32 %v2060_v19, %v1966_v18 }
 0x136   : > { %2065 = vpow2.f32 %v1266_v29  ;;  %v1634_v12 = vadd.f32 %v1633_v13, %v1632_v17 }
 0x137   : > { %2067 = vpow2.f32 %v1264_v58  ;;  %v2062_v40 = vpop.eup %2061  ;;  %v1323_v33 = vadd.f32 %v1322_v45, %v1321_v43  ;;  %v1639_v29 = vsel %vm1268_vm2, %v1582_v16, 0.0  ;;  %v1641_v27 = vsel %vm1268_vm2, %v1583_v15, 0.0 }
 0x138   : > { %v1324_v49 = vsel %vm1268_vm2, %v2062_v40, 0.0  ;;  %v1636_v24 = vadd.f32 %v1635_v61, %v1634_v12  ;;  %v1584_v58 = vmul.f32 %v2062_v40, %v1967_v20 }
 0x139   : > { %v1325_v54 = vadd.f32 %v1324_v49, %v1323_v33 }
 0x13a   : > { %v1638_v30 = vadd.f32 %v1637_v51, %v1636_v24  ;;  %v1643_v22 = vsel %vm1268_vm2, %v1584_v58, 0.0 }
 0x13b   : > { %v2064_v50 = vpop.eup %2063 }
 0x13c   : > { %v1326_v1 = vsel %vm1268_vm2, %v2064_v50, 0.0  ;;  %v1585_v31 = vmul.f32 %v2064_v50, %v1968_v52  ;;  %v1640_v32 = vadd.f32 %v1639_v29, %v1638_v30  ;;  %v1971_v50 = vld [vmem:[%s454_s23] ss:$0 sm:$0xff] }
 0x13d   : > { %v1327_v53 = vadd.f32 %v1326_v1, %v1325_v54 }
 0x13e   : > { %v1642_v34 = vadd.f32 %v1641_v27, %v1640_v32  ;;  %v1645_v19 = vsel %vm1268_vm2, %v1585_v31, 0.0 }
 0x140   : > { %v2066_v5 = vpop.eup %2065  ;;  %v1644_v37 = vadd.f32 %v1643_v22, %v1642_v34 }
 0x141   : > { %v2068_v8 = vpop.eup %2067  ;;  %v1330_v21 = vsel %vm1268_vm2, %v2066_v5, 0.0  ;;  %v1587_v41 = vmul.f32 %v2066_v5, %v1970_v38 }
 0x142   : > { %v1328_v11 = vsel %vm1268_vm2, %v2068_v8, 0.0  ;;  %v1586_v55 = vmul.f32 %v2068_v8, %v1969_v26  ;;  %v1646_v40 = vadd.f32 %v1645_v19, %v1644_v37 }
 0x143   : > { %v1329_v3 = vadd.f32 %v1328_v11, %v1327_v53  ;;  %v1649_v47 = vsel %vm1268_vm2, %v1587_v41, 0.0 }
 0x144   : > { %v1647_v63 = vsel %vm1268_vm2, %v1586_v55, 0.0 }
 0x145   : > { %v1331_v23 = vadd.f32 %v1330_v21, %v1329_v3  ;;  %v1648_v39 = vadd.f32 %v1647_v63, %v1646_v40 }
 0x147   : > { %v1651_v28 = vadd.f32 1e-06, %v1331_v23  ;;  %v1650_v14 = vadd.f32 %v1649_v47, %v1648_v39 }
 0x149   : > { %2069 = vrcp.f32 %v1651_v28 }
 0x153   : > { %v2070_v25 = vpop.eup %2069 }
 0x154   : > { %v1653_v42 = vmul.f32 %v2070_v25, %v1651_v28 }
 0x156   : > { %v1654_v45 = vsub.f32 2.0, %v1653_v42 }
 0x158   : > { %v1655_v43 = vmul.f32 %v2070_v25, %v1654_v45 }
 0x15a   : > { %v1656_v44 = vmul.f32 %v1655_v43, %v1650_v14 }
 0x15c   : > { %v1664_v57 = vadd.f32 %v1971_v50, %v1656_v44 }
 0x15e   : > { %v1665_v49 = vmul.f32 %v1664_v57, %v2446_v35  ;;  %v1698_v62 = vmul.f32 %v1664_v57, %v2448_v36 }
 0x160   : > { %v1666_v46 = vsub.f32 0.0, %v1665_v49  ;;  %v1668_v33 = vrot.slane %v1665_v49, 1  ;;  %v1671_v0 = vrot.slane %v1665_v49, 2  ;;  %v1674_v60 = vrot.slane %v1665_v49, 3 }
 0x161   : > { %v1678_v1 = vrot.slane %v1665_v49, 4  ;;  %v1699_v4 = vsub.f32 0.0, %v1698_v62  ;;  %v1701_v48 = vrot.slane %v1698_v62, 1  ;;  %v1704_v54 = vrot.slane %v1698_v62, 2 }
 0x162   : > { %v1670_v5 = vadd.f32 %v1668_v33, %v1665_v49  ;;  %v1676_v6 = vadd.f32 %v1674_v60, %v1666_v46  ;;  %v1677_v7 = vsub.f32 %v1666_v46, %v1671_v0  ;;  %v1707_v8 = vrot.slane %v1698_v62, 3 }
 0x163   : > { %v1710_v9 = vsub.f32 %v1699_v4, %v1704_v54  ;;  %v1711_v56 = vrot.slane %v1698_v62, 4  ;;  %v1703_v36 = vadd.f32 %v1701_v48, %v1698_v62 }
 0x164   : > { %v1680_v53 = vadd.f32 %v1678_v1, %v1676_v6  ;;  %v1681_v2 = vadd.f32 %v1678_v1, %v1677_v7  ;;  %v1682_v35 = vsub.f32 %v1677_v7, %v1674_v60  ;;  %v1709_v10 = vadd.f32 %v1707_v8, %v1699_v4 }
 0x165   : > { %v1714_v11 = vadd.f32 %v1711_v56, %v1710_v9  ;;  %v1673_v13 = vadd.f32 %v1671_v0, %v1670_v5  ;;  %v1715_v18 = vsub.f32 %v1710_v9, %v1707_v8  ;;  %v1706_v12 = vadd.f32 %v1704_v54, %v1703_v36 }
 0x166   : > { %v1684_v59 = vrot.slane %v1680_v53, 7  ;;  %v1687_v3 = vrot.slane %v1681_v2, 7  ;;  %v1713_v17 = vadd.f32 %v1711_v56, %v1709_v10  ;;  %v1690_v21 = vrot.slane %v1682_v35, 7 }
 0x167   : > { %v1720_v16 = vrot.slane %v1714_v11, 7  ;;  %v1723_v15 = vrot.slane %v1715_v18, 7  ;;  %1736 = sbr.rel (!%p2161_p5) target bundleno = 374 (0x176), region = 123 }
 0x168   : > { %v1693_v61 = vsel %vm1692_vm3, %v1673_v13, %v1684_v59  ;;  %v1717_v20 = vrot.slane %v1713_v17, 7 }
 0x169   : > { %v1695_v23 = vsel %vm1694_vm4, %v1693_v61, %v1687_v3 }
 0x16a   : > { %v1697_v51 = vsel %vm1696_vm5, %v1695_v23, %v1690_v21  ;;  %v1725_v28 = vsel %vm1692_vm3, %v1706_v12, %v1717_v20 }
 0x16b   : > { %1728 = vst [vmem:[%s451_s26] sm:$0xf] %v1697_v51  ;;  %v1726_v24 = vsel %vm1694_vm4, %v1725_v28, %v1720_v16 }
 0x16c   : > { %v1727_v52 = vsel %vm1696_vm5, %v1726_v24, %v1723_v15 }
 0x16d   : > { %1729 = vst [vmem:[%s451_s26 + $0x4] sm:$0xf] %v1727_v52 }
 0x172   : > { %v1754_v29 = vld [vmem:[%s451_s26] sm:$0xf] }
 0x173   : > { %1755 = vst [vmem:[%s1738_s30] sm:$0xf] %v1754_v29 }
 0x174   : > { %v1756_v58 = vld [vmem:[%s451_s26 + $0x4] sm:$0xf] }
 0x175   : > { %1757 = vst [vmem:[%s1738_s30 + $0x8] sm:$0xf] %v1756_v58 }
 0x176 PF: > { %p12_p11 = scmp.ge.s32.totalorder %s2145_s22, 4   ;;  %s2699_s18 = smov %s2089_s19 }
 0x177   : > { %s2700_s19 = smov %s2155_s25  ;;  %s2701_s20 = smov %s2145_s22 }
 0x178   :  { %14 = sbr.rel (!%p12_p11) target bundleno = 2 (0x2), region = 206 }

</bundles_post_ra>
